<compile_context>
chip_gen: v5e
topology: v5e:2x2
jax: 0.10.0
libtpu: 0.0.40
codegen_flags: <defaults>
</compile_context>

<pallas_src>
import functools

import jax
import jax.numpy as jnp
from jax import lax
from jax.experimental import pallas as pl
from jax.experimental.pallas import tpu as pltpu


# ----------------------------------------------------------------------------
# Fused Pallas kernel (all GRU layers + output linear)
# ----------------------------------------------------------------------------
def _make_fused_kernel(num_layers, T, B):
    """Build a kernel for `num_layers` stacked GRU layers + a Linear head.

    Ref layout (all VMEM, full-array blocks):
      x_ref                      [T*B, D]          time-major flattened input
      per layer l (4 refs):
        wi_ref                   [D_l, 3H]         fused input->gate weights (transposed)
        wh_ref                   [H,  3H]          fused hidden->gate weights (transposed)
        bi_ref                   [1,  3H]          b_ih with b_hr/b_hz pre-folded in
        bhn_ref                  [1,   H]          b_hn (must stay inside r*(...))
      wout_ref                   [H, 2]
      bout_ref                   [1, 2]
      out_ref                    [T*B, 2]
    """

    def kernel(*refs):
        x_ref = refs[0]
        layer_refs = refs[1:1 + 4 * num_layers]
        wout_ref = refs[1 + 4 * num_layers]
        bout_ref = refs[2 + 4 * num_layers]
        out_ref = refs[3 + 4 * num_layers]

        H = layer_refs[1].shape[0]          # wh of layer 0 is [H, 3H]

        def run_layer(gi_all, wh, bhn_row):
            # gi_all: [T*B, 3H] precomputed input-side gates (+ folded biases)
            # Hoist the b_hn broadcast out of the unrolled time loop.
            bhn = jnp.broadcast_to(bhn_row, (B, H))                  # [B, H]
            h = jnp.zeros((B, H), jnp.float32)
            outs = []
            for t in range(T):              # static unrolled time loop
                gi_t = gi_all[t * B:(t + 1) * B]                     # [B, 3H]
                gh = jnp.dot(h, wh, preferred_element_type=jnp.float32)  # [B, 3H]
                # One wide sigmoid over (r, z); tanh separate.
                rz = jax.nn.sigmoid(gi_t[:, :2 * H] + gh[:, :2 * H])
                r = rz[:, :H]
                z = rz[:, H:]
                n = jnp.tanh(gi_t[:, 2 * H:] + r * (gh[:, 2 * H:] + bhn))
                # h' = (1-z)*n + z*h  ==  n + z*(h - n)   (one fewer multiply)
                h = n + z * (h - n)
                outs.append(h)
            return jnp.concatenate(outs, axis=0)                     # [T*B, H]

        h_all = x_ref[...]                                           # [T*B, D]
        for l in range(num_layers):
            wi_ref, wh_ref, bi_ref, bhn_ref = layer_refs[4 * l:4 * l + 4]
            # Hoisted input projection: one big matmul instead of T tiny ones.
            gi = (jnp.dot(h_all, wi_ref[...], preferred_element_type=jnp.float32)
                  + bi_ref[...])                                     # [T*B, 3H]
            h_all = run_layer(gi, wh_ref[...], bhn_ref[...])
            # TODO(synk): GRU inter-layer dropout (training only) omitted - eval semantics.

        y = (jnp.dot(h_all, wout_ref[...], preferred_element_type=jnp.float32)
             + bout_ref[...])
        out_ref[...] = y.astype(out_ref.dtype)

    return kernel


# ----------------------------------------------------------------------------
# Wrapper
# ----------------------------------------------------------------------------
@functools.partial(jax.jit, static_argnames=("mag_nums",))
def model2_forward(x, params, *, mag_nums):
    """Reproduces Model2.forward (eval mode). x: [B, T, mag_nums + wifi_nums]."""
    x = x.astype(jnp.float32)
    # mag / wifi split + dropout (identity at eval) + concat  == x
    mag = x[:, :, :mag_nums]
    wifi = x[:, :, mag_nums:]
    # TODO(synk): training-mode nn.Dropout on wifi (needs RNG mask); identity at inference.
    x = jnp.concatenate([mag, wifi], axis=2)

    B, T, D = x.shape
    num_layers = len(params["gru"])
    H = params["gru"][0][1].shape[1]        # w_hh is [3H, H]

    # Time-major, flattened: row t*B + b.
    x_tm = jnp.transpose(x, (1, 0, 2)).reshape(T * B, D)

    args = [x_tm]
    for (w_ih, w_hh, b_ih, b_hh) in params["gru"]:
        # PyTorch packs gates as rows [r; z; n]. Single transpose per matrix.
        wi = w_ih.T                         # [D_l, 3H]
        wh = w_hh.T                         # [H,  3H]
        # Pre-fold b_hr, b_hz into the input bias; b_hn must stay separate.
        bi = jnp.concatenate([b_ih[:2 * H] + b_hh[:2 * H], b_ih[2 * H:]]).reshape(1, 3 * H)
        bhn = b_hh[2 * H:].reshape(1, H)
        args += [wi, wh, bi, bhn]
    args += [params["w_out"].T, params["b_out"].reshape(1, -1)]

    kernel = _make_fused_kernel(num_layers, T, B)
    y_flat = pl.pallas_call(
        kernel,
        out_shape=jax.ShapeDtypeStruct((T * B, 2), jnp.float32),
        in_specs=[pl.BlockSpec(memory_space=pltpu.MemorySpace.VMEM)] * len(args),
        out_specs=pl.BlockSpec(memory_space=pltpu.MemorySpace.VMEM),
    )(*args)

    y = y_flat.reshape(T, B, 2)
    return jnp.transpose(y, (1, 0, 2))      # back to [B, T, 2]


# ----------------------------------------------------------------------------
# Pure-JAX reference (for correctness check)
# ----------------------------------------------------------------------------
def gru_layer_ref(x_tbd, w_ih, w_hh, b_ih, b_hh):
    H = w_hh.shape[1]

    def step(h, x_t):
        gi = x_t @ w_ih.T + b_ih
        gh = h @ w_hh.T + b_hh
        r = jax.nn.sigmoid(gi[:, :H] + gh[:, :H])
        z = jax.nn.sigmoid(gi[:, H:2 * H] + gh[:, H:2 * H])
        n = jnp.tanh(gi[:, 2 * H:] + r * gh[:, 2 * H:])
        h_new = (1.0 - z) * n + z * h
        return h_new, h_new

    h0 = jnp.zeros((x_tbd.shape[1], H), jnp.float32)
    _, ys = lax.scan(step, h0, x_tbd)
    return ys


def model2_ref(x, params, *, mag_nums):
    x = x.astype(jnp.float32)
    h = jnp.transpose(x, (1, 0, 2))
    for (w_ih, w_hh, b_ih, b_hh) in params["gru"]:
        h = gru_layer_ref(h, w_ih, w_hh, b_ih, b_hh)
    y = h @ params["w_out"].T + params["b_out"]
    return jnp.transpose(y, (1, 0, 2))


# ----------------------------------------------------------------------------
# Parameter init (deterministic, matches PyTorch shapes & init distribution)
# ----------------------------------------------------------------------------
def init_params(key, wifi_nums, mag_nums, gru_layers, gru_dims):
    D_in = wifi_nums + mag_nums
    H = gru_dims
    params = {"gru": []}
    k = 1.0 / jnp.sqrt(H)
    for layer in range(gru_layers):
        d = D_in if layer == 0 else H
        key, k1, k2, k3, k4 = jax.random.split(key, 5)
        w_ih = jax.random.uniform(k1, (3 * H, d), jnp.float32, -k, k)
        w_hh = jax.random.uniform(k2, (3 * H, H), jnp.float32, -k, k)
        b_ih = jax.random.uniform(k3, (3 * H,), jnp.float32, -k, k)
        b_hh = jax.random.uniform(k4, (3 * H,), jnp.float32, -k, k)
        params["gru"].append((w_ih, w_hh, b_ih, b_hh))
    key, k5, k6 = jax.random.split(key, 3)
    kl = 1.0 / jnp.sqrt(H)
    params["w_out"] = jax.random.uniform(k5, (2, H), jnp.float32, -kl, kl)
    params["b_out"] = jax.random.uniform(k6, (2,), jnp.float32, -kl, kl)
    return params


if __name__ == "__main__":
    # Small shapes consistent with the module: 8 mag + 24 wifi features,
    # 2-layer GRU with hidden 32, batch 2, sequence length 8.
    wifi_nums, mag_nums = 24, 8
    gru_layers, gru_dims = 2, 32
    B, T = 2, 8

    key = jax.random.PRNGKey(0)
    key, kx, kp = jax.random.split(key, 3)
    x = jax.random.normal(kx, (B, T, mag_nums + wifi_nums), jnp.float32)
    params = init_params(kp, wifi_nums, mag_nums, gru_layers, gru_dims)

    out = model2_forward(x, params, mag_nums=mag_nums)
    out = jax.block_until_ready(out)

    ref = model2_ref(x, params, mag_nums=mag_nums)
    assert out.shape == (B, T, 2), out.shape
    assert jnp.allclose(out, ref, rtol=1e-4, atol=1e-4), (
        float(jnp.max(jnp.abs(out - ref))))

    print("KERNEL_OK")
</pallas_src>

<mosaic_0001>
module attributes {stable_mosaic.version = 11 : i64} {
  func.func @kernel(%arg0: memref<16x32xf32, #tpu.memory_space<vmem>>, %arg1: memref<32x96xf32, #tpu.memory_space<vmem>>, %arg2: memref<32x96xf32, #tpu.memory_space<vmem>>, %arg3: memref<1x96xf32, #tpu.memory_space<vmem>>, %arg4: memref<1x32xf32, #tpu.memory_space<vmem>>, %arg5: memref<32x96xf32, #tpu.memory_space<vmem>>, %arg6: memref<32x96xf32, #tpu.memory_space<vmem>>, %arg7: memref<1x96xf32, #tpu.memory_space<vmem>>, %arg8: memref<1x32xf32, #tpu.memory_space<vmem>>, %arg9: memref<32x2xf32, #tpu.memory_space<vmem>>, %arg10: memref<1x2xf32, #tpu.memory_space<vmem>>, %arg11: memref<16x2xf32, #tpu.memory_space<vmem>>) attributes {dimension_semantics = [], scalar_prefetch = 0 : i64, scratch_operands = 0 : i64, tpu.core_type = #tpu.core_type<tc>} {
    %c0 = arith.constant 0 : index
    %c0_0 = arith.constant 0 : index
    %0 = vector.load %arg0[%c0, %c0_0] : memref<16x32xf32, #tpu.memory_space<vmem>>, vector<16x32xf32>
    %c0_1 = arith.constant 0 : index
    %c0_2 = arith.constant 0 : index
    %1 = vector.load %arg1[%c0_1, %c0_2] : memref<32x96xf32, #tpu.memory_space<vmem>>, vector<32x96xf32>
    %cst = arith.constant dense<0.000000e+00> : vector<16x96xf32>
    %2 = tpu.matmul %0, %1, %cst {dimension_numbers = #tpu.dot_dimension_numbers<[1], [0], [0], [1], [0, 0, 1, 1], [], []>} : vector<16x32xf32>, vector<32x96xf32>, vector<16x96xf32> -> vector<16x96xf32>
    %c0_3 = arith.constant 0 : index
    %c0_4 = arith.constant 0 : index
    %3 = vector.load %arg3[%c0_3, %c0_4] : memref<1x96xf32, #tpu.memory_space<vmem>>, vector<1x96xf32>
    %4 = vector.broadcast %3 : vector<1x96xf32> to vector<16x96xf32>
    %5 = arith.addf %2, %4 : vector<16x96xf32>
    %c0_5 = arith.constant 0 : index
    %c0_6 = arith.constant 0 : index
    %6 = vector.load %arg2[%c0_5, %c0_6] : memref<32x96xf32, #tpu.memory_space<vmem>>, vector<32x96xf32>
    %c0_7 = arith.constant 0 : index
    %c0_8 = arith.constant 0 : index
    %7 = vector.load %arg4[%c0_7, %c0_8] : memref<1x32xf32, #tpu.memory_space<vmem>>, vector<1x32xf32>
    %8 = vector.shape_cast %7 : vector<1x32xf32> to vector<1x32xf32>
    %9 = vector.broadcast %8 : vector<1x32xf32> to vector<2x32xf32>
    %cst_9 = arith.constant 0.000000e+00 : f32
    %10 = vector.broadcast %cst_9 : f32 to vector<2x32xf32>
    %11 = vector.extract_strided_slice %5 {offsets = [0, 0], sizes = [2, 96], strides = [1, 1]} : vector<16x96xf32> to vector<2x96xf32>
    %cst_10 = arith.constant dense<0.000000e+00> : vector<2x96xf32>
    %12 = tpu.matmul %10, %6, %cst_10 {dimension_numbers = #tpu.dot_dimension_numbers<[1], [0], [0], [1], [0, 0, 1, 1], [], []>} : vector<2x32xf32>, vector<32x96xf32>, vector<2x96xf32> -> vector<2x96xf32>
    %13 = vector.extract_strided_slice %11 {offsets = [0, 0], sizes = [2, 64], strides = [1, 1]} : vector<2x96xf32> to vector<2x64xf32>
    %14 = vector.extract_strided_slice %12 {offsets = [0, 0], sizes = [2, 64], strides = [1, 1]} : vector<2x96xf32> to vector<2x64xf32>
    %15 = arith.addf %13, %14 : vector<2x64xf32>
    %16 = arith.negf %15 : vector<2x64xf32>
    %17 = math.exp %16 : vector<2x64xf32>
    %cst_11 = arith.constant 1.000000e+00 : f32
    %18 = vector.broadcast %cst_11 : f32 to vector<2x64xf32>
    %19 = arith.addf %18, %17 : vector<2x64xf32>
    %20 = arith.divf %18, %19 : vector<2x64xf32>
    %21 = vector.extract_strided_slice %20 {offsets = [0, 0], sizes = [2, 32], strides = [1, 1]} : vector<2x64xf32> to vector<2x32xf32>
    %22 = vector.extract_strided_slice %20 {offsets = [0, 32], sizes = [2, 32], strides = [1, 1]} : vector<2x64xf32> to vector<2x32xf32>
    %23 = vector.extract_strided_slice %11 {offsets = [0, 64], sizes = [2, 32], strides = [1, 1]} : vector<2x96xf32> to vector<2x32xf32>
    %24 = vector.extract_strided_slice %12 {offsets = [0, 64], sizes = [2, 32], strides = [1, 1]} : vector<2x96xf32> to vector<2x32xf32>
    %25 = arith.addf %24, %9 : vector<2x32xf32>
    %26 = arith.mulf %21, %25 : vector<2x32xf32>
    %27 = arith.addf %23, %26 : vector<2x32xf32>
    %28 = math.tanh %27 : vector<2x32xf32>
    %29 = arith.subf %10, %28 : vector<2x32xf32>
    %30 = arith.mulf %22, %29 : vector<2x32xf32>
    %31 = arith.addf %28, %30 : vector<2x32xf32>
    %32 = vector.extract_strided_slice %5 {offsets = [2, 0], sizes = [2, 96], strides = [1, 1]} : vector<16x96xf32> to vector<2x96xf32>
    %cst_12 = arith.constant dense<0.000000e+00> : vector<2x96xf32>
    %33 = tpu.matmul %31, %6, %cst_12 {dimension_numbers = #tpu.dot_dimension_numbers<[1], [0], [0], [1], [0, 0, 1, 1], [], []>} : vector<2x32xf32>, vector<32x96xf32>, vector<2x96xf32> -> vector<2x96xf32>
    %34 = vector.extract_strided_slice %32 {offsets = [0, 0], sizes = [2, 64], strides = [1, 1]} : vector<2x96xf32> to vector<2x64xf32>
    %35 = vector.extract_strided_slice %33 {offsets = [0, 0], sizes = [2, 64], strides = [1, 1]} : vector<2x96xf32> to vector<2x64xf32>
    %36 = arith.addf %34, %35 : vector<2x64xf32>
    %37 = arith.negf %36 : vector<2x64xf32>
    %38 = math.exp %37 : vector<2x64xf32>
    %cst_13 = arith.constant 1.000000e+00 : f32
    %39 = vector.broadcast %cst_13 : f32 to vector<2x64xf32>
    %40 = arith.addf %39, %38 : vector<2x64xf32>
    %41 = arith.divf %39, %40 : vector<2x64xf32>
    %42 = vector.extract_strided_slice %41 {offsets = [0, 0], sizes = [2, 32], strides = [1, 1]} : vector<2x64xf32> to vector<2x32xf32>
    %43 = vector.extract_strided_slice %41 {offsets = [0, 32], sizes = [2, 32], strides = [1, 1]} : vector<2x64xf32> to vector<2x32xf32>
    %44 = vector.extract_strided_slice %32 {offsets = [0, 64], sizes = [2, 32], strides = [1, 1]} : vector<2x96xf32> to vector<2x32xf32>
    %45 = vector.extract_strided_slice %33 {offsets = [0, 64], sizes = [2, 32], strides = [1, 1]} : vector<2x96xf32> to vector<2x32xf32>
    %46 = arith.addf %45, %9 : vector<2x32xf32>
    %47 = arith.mulf %42, %46 : vector<2x32xf32>
    %48 = arith.addf %44, %47 : vector<2x32xf32>
    %49 = math.tanh %48 : vector<2x32xf32>
    %50 = arith.subf %31, %49 : vector<2x32xf32>
    %51 = arith.mulf %43, %50 : vector<2x32xf32>
    %52 = arith.addf %49, %51 : vector<2x32xf32>
    %53 = vector.extract_strided_slice %5 {offsets = [4, 0], sizes = [2, 96], strides = [1, 1]} : vector<16x96xf32> to vector<2x96xf32>
    %cst_14 = arith.constant dense<0.000000e+00> : vector<2x96xf32>
    %54 = tpu.matmul %52, %6, %cst_14 {dimension_numbers = #tpu.dot_dimension_numbers<[1], [0], [0], [1], [0, 0, 1, 1], [], []>} : vector<2x32xf32>, vector<32x96xf32>, vector<2x96xf32> -> vector<2x96xf32>
    %55 = vector.extract_strided_slice %53 {offsets = [0, 0], sizes = [2, 64], strides = [1, 1]} : vector<2x96xf32> to vector<2x64xf32>
    %56 = vector.extract_strided_slice %54 {offsets = [0, 0], sizes = [2, 64], strides = [1, 1]} : vector<2x96xf32> to vector<2x64xf32>
    %57 = arith.addf %55, %56 : vector<2x64xf32>
    %58 = arith.negf %57 : vector<2x64xf32>
    %59 = math.exp %58 : vector<2x64xf32>
    %cst_15 = arith.constant 1.000000e+00 : f32
    %60 = vector.broadcast %cst_15 : f32 to vector<2x64xf32>
    %61 = arith.addf %60, %59 : vector<2x64xf32>
    %62 = arith.divf %60, %61 : vector<2x64xf32>
    %63 = vector.extract_strided_slice %62 {offsets = [0, 0], sizes = [2, 32], strides = [1, 1]} : vector<2x64xf32> to vector<2x32xf32>
    %64 = vector.extract_strided_slice %62 {offsets = [0, 32], sizes = [2, 32], strides = [1, 1]} : vector<2x64xf32> to vector<2x32xf32>
    %65 = vector.extract_strided_slice %53 {offsets = [0, 64], sizes = [2, 32], strides = [1, 1]} : vector<2x96xf32> to vector<2x32xf32>
    %66 = vector.extract_strided_slice %54 {offsets = [0, 64], sizes = [2, 32], strides = [1, 1]} : vector<2x96xf32> to vector<2x32xf32>
    %67 = arith.addf %66, %9 : vector<2x32xf32>
    %68 = arith.mulf %63, %67 : vector<2x32xf32>
    %69 = arith.addf %65, %68 : vector<2x32xf32>
    %70 = math.tanh %69 : vector<2x32xf32>
    %71 = arith.subf %52, %70 : vector<2x32xf32>
    %72 = arith.mulf %64, %71 : vector<2x32xf32>
    %73 = arith.addf %70, %72 : vector<2x32xf32>
    %74 = vector.extract_strided_slice %5 {offsets = [6, 0], sizes = [2, 96], strides = [1, 1]} : vector<16x96xf32> to vector<2x96xf32>
    %cst_16 = arith.constant dense<0.000000e+00> : vector<2x96xf32>
    %75 = tpu.matmul %73, %6, %cst_16 {dimension_numbers = #tpu.dot_dimension_numbers<[1], [0], [0], [1], [0, 0, 1, 1], [], []>} : vector<2x32xf32>, vector<32x96xf32>, vector<2x96xf32> -> vector<2x96xf32>
    %76 = vector.extract_strided_slice %74 {offsets = [0, 0], sizes = [2, 64], strides = [1, 1]} : vector<2x96xf32> to vector<2x64xf32>
    %77 = vector.extract_strided_slice %75 {offsets = [0, 0], sizes = [2, 64], strides = [1, 1]} : vector<2x96xf32> to vector<2x64xf32>
    %78 = arith.addf %76, %77 : vector<2x64xf32>
    %79 = arith.negf %78 : vector<2x64xf32>
    %80 = math.exp %79 : vector<2x64xf32>
    %cst_17 = arith.constant 1.000000e+00 : f32
    %81 = vector.broadcast %cst_17 : f32 to vector<2x64xf32>
    %82 = arith.addf %81, %80 : vector<2x64xf32>
    %83 = arith.divf %81, %82 : vector<2x64xf32>
    %84 = vector.extract_strided_slice %83 {offsets = [0, 0], sizes = [2, 32], strides = [1, 1]} : vector<2x64xf32> to vector<2x32xf32>
    %85 = vector.extract_strided_slice %83 {offsets = [0, 32], sizes = [2, 32], strides = [1, 1]} : vector<2x64xf32> to vector<2x32xf32>
    %86 = vector.extract_strided_slice %74 {offsets = [0, 64], sizes = [2, 32], strides = [1, 1]} : vector<2x96xf32> to vector<2x32xf32>
    %87 = vector.extract_strided_slice %75 {offsets = [0, 64], sizes = [2, 32], strides = [1, 1]} : vector<2x96xf32> to vector<2x32xf32>
    %88 = arith.addf %87, %9 : vector<2x32xf32>
    %89 = arith.mulf %84, %88 : vector<2x32xf32>
    %90 = arith.addf %86, %89 : vector<2x32xf32>
    %91 = math.tanh %90 : vector<2x32xf32>
    %92 = arith.subf %73, %91 : vector<2x32xf32>
    %93 = arith.mulf %85, %92 : vector<2x32xf32>
    %94 = arith.addf %91, %93 : vector<2x32xf32>
    %95 = vector.extract_strided_slice %5 {offsets = [8, 0], sizes = [2, 96], strides = [1, 1]} : vector<16x96xf32> to vector<2x96xf32>
    %cst_18 = arith.constant dense<0.000000e+00> : vector<2x96xf32>
    %96 = tpu.matmul %94, %6, %cst_18 {dimension_numbers = #tpu.dot_dimension_numbers<[1], [0], [0], [1], [0, 0, 1, 1], [], []>} : vector<2x32xf32>, vector<32x96xf32>, vector<2x96xf32> -> vector<2x96xf32>
    %97 = vector.extract_strided_slice %95 {offsets = [0, 0], sizes = [2, 64], strides = [1, 1]} : vector<2x96xf32> to vector<2x64xf32>
    %98 = vector.extract_strided_slice %96 {offsets = [0, 0], sizes = [2, 64], strides = [1, 1]} : vector<2x96xf32> to vector<2x64xf32>
    %99 = arith.addf %97, %98 : vector<2x64xf32>
    %100 = arith.negf %99 : vector<2x64xf32>
    %101 = math.exp %100 : vector<2x64xf32>
    %cst_19 = arith.constant 1.000000e+00 : f32
    %102 = vector.broadcast %cst_19 : f32 to vector<2x64xf32>
    %103 = arith.addf %102, %101 : vector<2x64xf32>
    %104 = arith.divf %102, %103 : vector<2x64xf32>
    %105 = vector.extract_strided_slice %104 {offsets = [0, 0], sizes = [2, 32], strides = [1, 1]} : vector<2x64xf32> to vector<2x32xf32>
    %106 = vector.extract_strided_slice %104 {offsets = [0, 32], sizes = [2, 32], strides = [1, 1]} : vector<2x64xf32> to vector<2x32xf32>
    %107 = vector.extract_strided_slice %95 {offsets = [0, 64], sizes = [2, 32], strides = [1, 1]} : vector<2x96xf32> to vector<2x32xf32>
    %108 = vector.extract_strided_slice %96 {offsets = [0, 64], sizes = [2, 32], strides = [1, 1]} : vector<2x96xf32> to vector<2x32xf32>
    %109 = arith.addf %108, %9 : vector<2x32xf32>
    %110 = arith.mulf %105, %109 : vector<2x32xf32>
    %111 = arith.addf %107, %110 : vector<2x32xf32>
    %112 = math.tanh %111 : vector<2x32xf32>
    %113 = arith.subf %94, %112 : vector<2x32xf32>
    %114 = arith.mulf %106, %113 : vector<2x32xf32>
    %115 = arith.addf %112, %114 : vector<2x32xf32>
    %116 = vector.extract_strided_slice %5 {offsets = [10, 0], sizes = [2, 96], strides = [1, 1]} : vector<16x96xf32> to vector<2x96xf32>
    %cst_20 = arith.constant dense<0.000000e+00> : vector<2x96xf32>
    %117 = tpu.matmul %115, %6, %cst_20 {dimension_numbers = #tpu.dot_dimension_numbers<[1], [0], [0], [1], [0, 0, 1, 1], [], []>} : vector<2x32xf32>, vector<32x96xf32>, vector<2x96xf32> -> vector<2x96xf32>
    %118 = vector.extract_strided_slice %116 {offsets = [0, 0], sizes = [2, 64], strides = [1, 1]} : vector<2x96xf32> to vector<2x64xf32>
    %119 = vector.extract_strided_slice %117 {offsets = [0, 0], sizes = [2, 64], strides = [1, 1]} : vector<2x96xf32> to vector<2x64xf32>
    %120 = arith.addf %118, %119 : vector<2x64xf32>
    %121 = arith.negf %120 : vector<2x64xf32>
    %122 = math.exp %121 : vector<2x64xf32>
    %cst_21 = arith.constant 1.000000e+00 : f32
    %123 = vector.broadcast %cst_21 : f32 to vector<2x64xf32>
    %124 = arith.addf %123, %122 : vector<2x64xf32>
    %125 = arith.divf %123, %124 : vector<2x64xf32>
    %126 = vector.extract_strided_slice %125 {offsets = [0, 0], sizes = [2, 32], strides = [1, 1]} : vector<2x64xf32> to vector<2x32xf32>
    %127 = vector.extract_strided_slice %125 {offsets = [0, 32], sizes = [2, 32], strides = [1, 1]} : vector<2x64xf32> to vector<2x32xf32>
    %128 = vector.extract_strided_slice %116 {offsets = [0, 64], sizes = [2, 32], strides = [1, 1]} : vector<2x96xf32> to vector<2x32xf32>
    %129 = vector.extract_strided_slice %117 {offsets = [0, 64], sizes = [2, 32], strides = [1, 1]} : vector<2x96xf32> to vector<2x32xf32>
    %130 = arith.addf %129, %9 : vector<2x32xf32>
    %131 = arith.mulf %126, %130 : vector<2x32xf32>
    %132 = arith.addf %128, %131 : vector<2x32xf32>
    %133 = math.tanh %132 : vector<2x32xf32>
    %134 = arith.subf %115, %133 : vector<2x32xf32>
    %135 = arith.mulf %127, %134 : vector<2x32xf32>
    %136 = arith.addf %133, %135 : vector<2x32xf32>
    %137 = vector.extract_strided_slice %5 {offsets = [12, 0], sizes = [2, 96], strides = [1, 1]} : vector<16x96xf32> to vector<2x96xf32>
    %cst_22 = arith.constant dense<0.000000e+00> : vector<2x96xf32>
    %138 = tpu.matmul %136, %6, %cst_22 {dimension_numbers = #tpu.dot_dimension_numbers<[1], [0], [0], [1], [0, 0, 1, 1], [], []>} : vector<2x32xf32>, vector<32x96xf32>, vector<2x96xf32> -> vector<2x96xf32>
    %139 = vector.extract_strided_slice %137 {offsets = [0, 0], sizes = [2, 64], strides = [1, 1]} : vector<2x96xf32> to vector<2x64xf32>
    %140 = vector.extract_strided_slice %138 {offsets = [0, 0], sizes = [2, 64], strides = [1, 1]} : vector<2x96xf32> to vector<2x64xf32>
    %141 = arith.addf %139, %140 : vector<2x64xf32>
    %142 = arith.negf %141 : vector<2x64xf32>
    %143 = math.exp %142 : vector<2x64xf32>
    %cst_23 = arith.constant 1.000000e+00 : f32
    %144 = vector.broadcast %cst_23 : f32 to vector<2x64xf32>
    %145 = arith.addf %144, %143 : vector<2x64xf32>
    %146 = arith.divf %144, %145 : vector<2x64xf32>
    %147 = vector.extract_strided_slice %146 {offsets = [0, 0], sizes = [2, 32], strides = [1, 1]} : vector<2x64xf32> to vector<2x32xf32>
    %148 = vector.extract_strided_slice %146 {offsets = [0, 32], sizes = [2, 32], strides = [1, 1]} : vector<2x64xf32> to vector<2x32xf32>
    %149 = vector.extract_strided_slice %137 {offsets = [0, 64], sizes = [2, 32], strides = [1, 1]} : vector<2x96xf32> to vector<2x32xf32>
    %150 = vector.extract_strided_slice %138 {offsets = [0, 64], sizes = [2, 32], strides = [1, 1]} : vector<2x96xf32> to vector<2x32xf32>
    %151 = arith.addf %150, %9 : vector<2x32xf32>
    %152 = arith.mulf %147, %151 : vector<2x32xf32>
    %153 = arith.addf %149, %152 : vector<2x32xf32>
    %154 = math.tanh %153 : vector<2x32xf32>
    %155 = arith.subf %136, %154 : vector<2x32xf32>
    %156 = arith.mulf %148, %155 : vector<2x32xf32>
    %157 = arith.addf %154, %156 : vector<2x32xf32>
    %158 = vector.extract_strided_slice %5 {offsets = [14, 0], sizes = [2, 96], strides = [1, 1]} : vector<16x96xf32> to vector<2x96xf32>
    %cst_24 = arith.constant dense<0.000000e+00> : vector<2x96xf32>
    %159 = tpu.matmul %157, %6, %cst_24 {dimension_numbers = #tpu.dot_dimension_numbers<[1], [0], [0], [1], [0, 0, 1, 1], [], []>} : vector<2x32xf32>, vector<32x96xf32>, vector<2x96xf32> -> vector<2x96xf32>
    %160 = vector.extract_strided_slice %158 {offsets = [0, 0], sizes = [2, 64], strides = [1, 1]} : vector<2x96xf32> to vector<2x64xf32>
    %161 = vector.extract_strided_slice %159 {offsets = [0, 0], sizes = [2, 64], strides = [1, 1]} : vector<2x96xf32> to vector<2x64xf32>
    %162 = arith.addf %160, %161 : vector<2x64xf32>
    %163 = arith.negf %162 : vector<2x64xf32>
    %164 = math.exp %163 : vector<2x64xf32>
    %cst_25 = arith.constant 1.000000e+00 : f32
    %165 = vector.broadcast %cst_25 : f32 to vector<2x64xf32>
    %166 = arith.addf %165, %164 : vector<2x64xf32>
    %167 = arith.divf %165, %166 : vector<2x64xf32>
    %168 = vector.extract_strided_slice %167 {offsets = [0, 0], sizes = [2, 32], strides = [1, 1]} : vector<2x64xf32> to vector<2x32xf32>
    %169 = vector.extract_strided_slice %167 {offsets = [0, 32], sizes = [2, 32], strides = [1, 1]} : vector<2x64xf32> to vector<2x32xf32>
    %170 = vector.extract_strided_slice %158 {offsets = [0, 64], sizes = [2, 32], strides = [1, 1]} : vector<2x96xf32> to vector<2x32xf32>
    %171 = vector.extract_strided_slice %159 {offsets = [0, 64], sizes = [2, 32], strides = [1, 1]} : vector<2x96xf32> to vector<2x32xf32>
    %172 = arith.addf %171, %9 : vector<2x32xf32>
    %173 = arith.mulf %168, %172 : vector<2x32xf32>
    %174 = arith.addf %170, %173 : vector<2x32xf32>
    %175 = math.tanh %174 : vector<2x32xf32>
    %176 = arith.subf %157, %175 : vector<2x32xf32>
    %177 = arith.mulf %169, %176 : vector<2x32xf32>
    %178 = arith.addf %175, %177 : vector<2x32xf32>
    %179 = tpu.concatenate %31, %52, %73, %94, %115, %136, %157, %178 in 0 : vector<2x32xf32>, vector<2x32xf32>, vector<2x32xf32>, vector<2x32xf32>, vector<2x32xf32>, vector<2x32xf32>, vector<2x32xf32>, vector<2x32xf32> -> vector<16x32xf32>
    %c0_26 = arith.constant 0 : index
    %c0_27 = arith.constant 0 : index
    %180 = vector.load %arg5[%c0_26, %c0_27] : memref<32x96xf32, #tpu.memory_space<vmem>>, vector<32x96xf32>
    %cst_28 = arith.constant dense<0.000000e+00> : vector<16x96xf32>
    %181 = tpu.matmul %179, %180, %cst_28 {dimension_numbers = #tpu.dot_dimension_numbers<[1], [0], [0], [1], [0, 0, 1, 1], [], []>} : vector<16x32xf32>, vector<32x96xf32>, vector<16x96xf32> -> vector<16x96xf32>
    %c0_29 = arith.constant 0 : index
    %c0_30 = arith.constant 0 : index
    %182 = vector.load %arg7[%c0_29, %c0_30] : memref<1x96xf32, #tpu.memory_space<vmem>>, vector<1x96xf32>
    %183 = vector.broadcast %182 : vector<1x96xf32> to vector<16x96xf32>
    %184 = arith.addf %181, %183 : vector<16x96xf32>
    %c0_31 = arith.constant 0 : index
    %c0_32 = arith.constant 0 : index
    %185 = vector.load %arg6[%c0_31, %c0_32] : memref<32x96xf32, #tpu.memory_space<vmem>>, vector<32x96xf32>
    %c0_33 = arith.constant 0 : index
    %c0_34 = arith.constant 0 : index
    %186 = vector.load %arg8[%c0_33, %c0_34] : memref<1x32xf32, #tpu.memory_space<vmem>>, vector<1x32xf32>
    %187 = vector.shape_cast %186 : vector<1x32xf32> to vector<1x32xf32>
    %188 = vector.broadcast %187 : vector<1x32xf32> to vector<2x32xf32>
    %cst_35 = arith.constant 0.000000e+00 : f32
    %189 = vector.broadcast %cst_35 : f32 to vector<2x32xf32>
    %190 = vector.extract_strided_slice %184 {offsets = [0, 0], sizes = [2, 96], strides = [1, 1]} : vector<16x96xf32> to vector<2x96xf32>
    %cst_36 = arith.constant dense<0.000000e+00> : vector<2x96xf32>
    %191 = tpu.matmul %189, %185, %cst_36 {dimension_numbers = #tpu.dot_dimension_numbers<[1], [0], [0], [1], [0, 0, 1, 1], [], []>} : vector<2x32xf32>, vector<32x96xf32>, vector<2x96xf32> -> vector<2x96xf32>
    %192 = vector.extract_strided_slice %190 {offsets = [0, 0], sizes = [2, 64], strides = [1, 1]} : vector<2x96xf32> to vector<2x64xf32>
    %193 = vector.extract_strided_slice %191 {offsets = [0, 0], sizes = [2, 64], strides = [1, 1]} : vector<2x96xf32> to vector<2x64xf32>
    %194 = arith.addf %192, %193 : vector<2x64xf32>
    %195 = arith.negf %194 : vector<2x64xf32>
    %196 = math.exp %195 : vector<2x64xf32>
    %cst_37 = arith.constant 1.000000e+00 : f32
    %197 = vector.broadcast %cst_37 : f32 to vector<2x64xf32>
    %198 = arith.addf %197, %196 : vector<2x64xf32>
    %199 = arith.divf %197, %198 : vector<2x64xf32>
    %200 = vector.extract_strided_slice %199 {offsets = [0, 0], sizes = [2, 32], strides = [1, 1]} : vector<2x64xf32> to vector<2x32xf32>
    %201 = vector.extract_strided_slice %199 {offsets = [0, 32], sizes = [2, 32], strides = [1, 1]} : vector<2x64xf32> to vector<2x32xf32>
    %202 = vector.extract_strided_slice %190 {offsets = [0, 64], sizes = [2, 32], strides = [1, 1]} : vector<2x96xf32> to vector<2x32xf32>
    %203 = vector.extract_strided_slice %191 {offsets = [0, 64], sizes = [2, 32], strides = [1, 1]} : vector<2x96xf32> to vector<2x32xf32>
    %204 = arith.addf %203, %188 : vector<2x32xf32>
    %205 = arith.mulf %200, %204 : vector<2x32xf32>
    %206 = arith.addf %202, %205 : vector<2x32xf32>
    %207 = math.tanh %206 : vector<2x32xf32>
    %208 = arith.subf %189, %207 : vector<2x32xf32>
    %209 = arith.mulf %201, %208 : vector<2x32xf32>
    %210 = arith.addf %207, %209 : vector<2x32xf32>
    %211 = vector.extract_strided_slice %184 {offsets = [2, 0], sizes = [2, 96], strides = [1, 1]} : vector<16x96xf32> to vector<2x96xf32>
    %cst_38 = arith.constant dense<0.000000e+00> : vector<2x96xf32>
    %212 = tpu.matmul %210, %185, %cst_38 {dimension_numbers = #tpu.dot_dimension_numbers<[1], [0], [0], [1], [0, 0, 1, 1], [], []>} : vector<2x32xf32>, vector<32x96xf32>, vector<2x96xf32> -> vector<2x96xf32>
    %213 = vector.extract_strided_slice %211 {offsets = [0, 0], sizes = [2, 64], strides = [1, 1]} : vector<2x96xf32> to vector<2x64xf32>
    %214 = vector.extract_strided_slice %212 {offsets = [0, 0], sizes = [2, 64], strides = [1, 1]} : vector<2x96xf32> to vector<2x64xf32>
    %215 = arith.addf %213, %214 : vector<2x64xf32>
    %216 = arith.negf %215 : vector<2x64xf32>
    %217 = math.exp %216 : vector<2x64xf32>
    %cst_39 = arith.constant 1.000000e+00 : f32
    %218 = vector.broadcast %cst_39 : f32 to vector<2x64xf32>
    %219 = arith.addf %218, %217 : vector<2x64xf32>
    %220 = arith.divf %218, %219 : vector<2x64xf32>
    %221 = vector.extract_strided_slice %220 {offsets = [0, 0], sizes = [2, 32], strides = [1, 1]} : vector<2x64xf32> to vector<2x32xf32>
    %222 = vector.extract_strided_slice %220 {offsets = [0, 32], sizes = [2, 32], strides = [1, 1]} : vector<2x64xf32> to vector<2x32xf32>
    %223 = vector.extract_strided_slice %211 {offsets = [0, 64], sizes = [2, 32], strides = [1, 1]} : vector<2x96xf32> to vector<2x32xf32>
    %224 = vector.extract_strided_slice %212 {offsets = [0, 64], sizes = [2, 32], strides = [1, 1]} : vector<2x96xf32> to vector<2x32xf32>
    %225 = arith.addf %224, %188 : vector<2x32xf32>
    %226 = arith.mulf %221, %225 : vector<2x32xf32>
    %227 = arith.addf %223, %226 : vector<2x32xf32>
    %228 = math.tanh %227 : vector<2x32xf32>
    %229 = arith.subf %210, %228 : vector<2x32xf32>
    %230 = arith.mulf %222, %229 : vector<2x32xf32>
    %231 = arith.addf %228, %230 : vector<2x32xf32>
    %232 = vector.extract_strided_slice %184 {offsets = [4, 0], sizes = [2, 96], strides = [1, 1]} : vector<16x96xf32> to vector<2x96xf32>
    %cst_40 = arith.constant dense<0.000000e+00> : vector<2x96xf32>
    %233 = tpu.matmul %231, %185, %cst_40 {dimension_numbers = #tpu.dot_dimension_numbers<[1], [0], [0], [1], [0, 0, 1, 1], [], []>} : vector<2x32xf32>, vector<32x96xf32>, vector<2x96xf32> -> vector<2x96xf32>
    %234 = vector.extract_strided_slice %232 {offsets = [0, 0], sizes = [2, 64], strides = [1, 1]} : vector<2x96xf32> to vector<2x64xf32>
    %235 = vector.extract_strided_slice %233 {offsets = [0, 0], sizes = [2, 64], strides = [1, 1]} : vector<2x96xf32> to vector<2x64xf32>
    %236 = arith.addf %234, %235 : vector<2x64xf32>
    %237 = arith.negf %236 : vector<2x64xf32>
    %238 = math.exp %237 : vector<2x64xf32>
    %cst_41 = arith.constant 1.000000e+00 : f32
    %239 = vector.broadcast %cst_41 : f32 to vector<2x64xf32>
    %240 = arith.addf %239, %238 : vector<2x64xf32>
    %241 = arith.divf %239, %240 : vector<2x64xf32>
    %242 = vector.extract_strided_slice %241 {offsets = [0, 0], sizes = [2, 32], strides = [1, 1]} : vector<2x64xf32> to vector<2x32xf32>
    %243 = vector.extract_strided_slice %241 {offsets = [0, 32], sizes = [2, 32], strides = [1, 1]} : vector<2x64xf32> to vector<2x32xf32>
    %244 = vector.extract_strided_slice %232 {offsets = [0, 64], sizes = [2, 32], strides = [1, 1]} : vector<2x96xf32> to vector<2x32xf32>
    %245 = vector.extract_strided_slice %233 {offsets = [0, 64], sizes = [2, 32], strides = [1, 1]} : vector<2x96xf32> to vector<2x32xf32>
    %246 = arith.addf %245, %188 : vector<2x32xf32>
    %247 = arith.mulf %242, %246 : vector<2x32xf32>
    %248 = arith.addf %244, %247 : vector<2x32xf32>
    %249 = math.tanh %248 : vector<2x32xf32>
    %250 = arith.subf %231, %249 : vector<2x32xf32>
    %251 = arith.mulf %243, %250 : vector<2x32xf32>
    %252 = arith.addf %249, %251 : vector<2x32xf32>
    %253 = vector.extract_strided_slice %184 {offsets = [6, 0], sizes = [2, 96], strides = [1, 1]} : vector<16x96xf32> to vector<2x96xf32>
    %cst_42 = arith.constant dense<0.000000e+00> : vector<2x96xf32>
    %254 = tpu.matmul %252, %185, %cst_42 {dimension_numbers = #tpu.dot_dimension_numbers<[1], [0], [0], [1], [0, 0, 1, 1], [], []>} : vector<2x32xf32>, vector<32x96xf32>, vector<2x96xf32> -> vector<2x96xf32>
    %255 = vector.extract_strided_slice %253 {offsets = [0, 0], sizes = [2, 64], strides = [1, 1]} : vector<2x96xf32> to vector<2x64xf32>
    %256 = vector.extract_strided_slice %254 {offsets = [0, 0], sizes = [2, 64], strides = [1, 1]} : vector<2x96xf32> to vector<2x64xf32>
    %257 = arith.addf %255, %256 : vector<2x64xf32>
    %258 = arith.negf %257 : vector<2x64xf32>
    %259 = math.exp %258 : vector<2x64xf32>
    %cst_43 = arith.constant 1.000000e+00 : f32
    %260 = vector.broadcast %cst_43 : f32 to vector<2x64xf32>
    %261 = arith.addf %260, %259 : vector<2x64xf32>
    %262 = arith.divf %260, %261 : vector<2x64xf32>
    %263 = vector.extract_strided_slice %262 {offsets = [0, 0], sizes = [2, 32], strides = [1, 1]} : vector<2x64xf32> to vector<2x32xf32>
    %264 = vector.extract_strided_slice %262 {offsets = [0, 32], sizes = [2, 32], strides = [1, 1]} : vector<2x64xf32> to vector<2x32xf32>
    %265 = vector.extract_strided_slice %253 {offsets = [0, 64], sizes = [2, 32], strides = [1, 1]} : vector<2x96xf32> to vector<2x32xf32>
    %266 = vector.extract_strided_slice %254 {offsets = [0, 64], sizes = [2, 32], strides = [1, 1]} : vector<2x96xf32> to vector<2x32xf32>
    %267 = arith.addf %266, %188 : vector<2x32xf32>
    %268 = arith.mulf %263, %267 : vector<2x32xf32>
    %269 = arith.addf %265, %268 : vector<2x32xf32>
    %270 = math.tanh %269 : vector<2x32xf32>
    %271 = arith.subf %252, %270 : vector<2x32xf32>
    %272 = arith.mulf %264, %271 : vector<2x32xf32>
    %273 = arith.addf %270, %272 : vector<2x32xf32>
    %274 = vector.extract_strided_slice %184 {offsets = [8, 0], sizes = [2, 96], strides = [1, 1]} : vector<16x96xf32> to vector<2x96xf32>
    %cst_44 = arith.constant dense<0.000000e+00> : vector<2x96xf32>
    %275 = tpu.matmul %273, %185, %cst_44 {dimension_numbers = #tpu.dot_dimension_numbers<[1], [0], [0], [1], [0, 0, 1, 1], [], []>} : vector<2x32xf32>, vector<32x96xf32>, vector<2x96xf32> -> vector<2x96xf32>
    %276 = vector.extract_strided_slice %274 {offsets = [0, 0], sizes = [2, 64], strides = [1, 1]} : vector<2x96xf32> to vector<2x64xf32>
    %277 = vector.extract_strided_slice %275 {offsets = [0, 0], sizes = [2, 64], strides = [1, 1]} : vector<2x96xf32> to vector<2x64xf32>
    %278 = arith.addf %276, %277 : vector<2x64xf32>
    %279 = arith.negf %278 : vector<2x64xf32>
    %280 = math.exp %279 : vector<2x64xf32>
    %cst_45 = arith.constant 1.000000e+00 : f32
    %281 = vector.broadcast %cst_45 : f32 to vector<2x64xf32>
    %282 = arith.addf %281, %280 : vector<2x64xf32>
    %283 = arith.divf %281, %282 : vector<2x64xf32>
    %284 = vector.extract_strided_slice %283 {offsets = [0, 0], sizes = [2, 32], strides = [1, 1]} : vector<2x64xf32> to vector<2x32xf32>
    %285 = vector.extract_strided_slice %283 {offsets = [0, 32], sizes = [2, 32], strides = [1, 1]} : vector<2x64xf32> to vector<2x32xf32>
    %286 = vector.extract_strided_slice %274 {offsets = [0, 64], sizes = [2, 32], strides = [1, 1]} : vector<2x96xf32> to vector<2x32xf32>
    %287 = vector.extract_strided_slice %275 {offsets = [0, 64], sizes = [2, 32], strides = [1, 1]} : vector<2x96xf32> to vector<2x32xf32>
    %288 = arith.addf %287, %188 : vector<2x32xf32>
    %289 = arith.mulf %284, %288 : vector<2x32xf32>
    %290 = arith.addf %286, %289 : vector<2x32xf32>
    %291 = math.tanh %290 : vector<2x32xf32>
    %292 = arith.subf %273, %291 : vector<2x32xf32>
    %293 = arith.mulf %285, %292 : vector<2x32xf32>
    %294 = arith.addf %291, %293 : vector<2x32xf32>
    %295 = vector.extract_strided_slice %184 {offsets = [10, 0], sizes = [2, 96], strides = [1, 1]} : vector<16x96xf32> to vector<2x96xf32>
    %cst_46 = arith.constant dense<0.000000e+00> : vector<2x96xf32>
    %296 = tpu.matmul %294, %185, %cst_46 {dimension_numbers = #tpu.dot_dimension_numbers<[1], [0], [0], [1], [0, 0, 1, 1], [], []>} : vector<2x32xf32>, vector<32x96xf32>, vector<2x96xf32> -> vector<2x96xf32>
    %297 = vector.extract_strided_slice %295 {offsets = [0, 0], sizes = [2, 64], strides = [1, 1]} : vector<2x96xf32> to vector<2x64xf32>
    %298 = vector.extract_strided_slice %296 {offsets = [0, 0], sizes = [2, 64], strides = [1, 1]} : vector<2x96xf32> to vector<2x64xf32>
    %299 = arith.addf %297, %298 : vector<2x64xf32>
    %300 = arith.negf %299 : vector<2x64xf32>
    %301 = math.exp %300 : vector<2x64xf32>
    %cst_47 = arith.constant 1.000000e+00 : f32
    %302 = vector.broadcast %cst_47 : f32 to vector<2x64xf32>
    %303 = arith.addf %302, %301 : vector<2x64xf32>
    %304 = arith.divf %302, %303 : vector<2x64xf32>
    %305 = vector.extract_strided_slice %304 {offsets = [0, 0], sizes = [2, 32], strides = [1, 1]} : vector<2x64xf32> to vector<2x32xf32>
    %306 = vector.extract_strided_slice %304 {offsets = [0, 32], sizes = [2, 32], strides = [1, 1]} : vector<2x64xf32> to vector<2x32xf32>
    %307 = vector.extract_strided_slice %295 {offsets = [0, 64], sizes = [2, 32], strides = [1, 1]} : vector<2x96xf32> to vector<2x32xf32>
    %308 = vector.extract_strided_slice %296 {offsets = [0, 64], sizes = [2, 32], strides = [1, 1]} : vector<2x96xf32> to vector<2x32xf32>
    %309 = arith.addf %308, %188 : vector<2x32xf32>
    %310 = arith.mulf %305, %309 : vector<2x32xf32>
    %311 = arith.addf %307, %310 : vector<2x32xf32>
    %312 = math.tanh %311 : vector<2x32xf32>
    %313 = arith.subf %294, %312 : vector<2x32xf32>
    %314 = arith.mulf %306, %313 : vector<2x32xf32>
    %315 = arith.addf %312, %314 : vector<2x32xf32>
    %316 = vector.extract_strided_slice %184 {offsets = [12, 0], sizes = [2, 96], strides = [1, 1]} : vector<16x96xf32> to vector<2x96xf32>
    %cst_48 = arith.constant dense<0.000000e+00> : vector<2x96xf32>
    %317 = tpu.matmul %315, %185, %cst_48 {dimension_numbers = #tpu.dot_dimension_numbers<[1], [0], [0], [1], [0, 0, 1, 1], [], []>} : vector<2x32xf32>, vector<32x96xf32>, vector<2x96xf32> -> vector<2x96xf32>
    %318 = vector.extract_strided_slice %316 {offsets = [0, 0], sizes = [2, 64], strides = [1, 1]} : vector<2x96xf32> to vector<2x64xf32>
    %319 = vector.extract_strided_slice %317 {offsets = [0, 0], sizes = [2, 64], strides = [1, 1]} : vector<2x96xf32> to vector<2x64xf32>
    %320 = arith.addf %318, %319 : vector<2x64xf32>
    %321 = arith.negf %320 : vector<2x64xf32>
    %322 = math.exp %321 : vector<2x64xf32>
    %cst_49 = arith.constant 1.000000e+00 : f32
    %323 = vector.broadcast %cst_49 : f32 to vector<2x64xf32>
    %324 = arith.addf %323, %322 : vector<2x64xf32>
    %325 = arith.divf %323, %324 : vector<2x64xf32>
    %326 = vector.extract_strided_slice %325 {offsets = [0, 0], sizes = [2, 32], strides = [1, 1]} : vector<2x64xf32> to vector<2x32xf32>
    %327 = vector.extract_strided_slice %325 {offsets = [0, 32], sizes = [2, 32], strides = [1, 1]} : vector<2x64xf32> to vector<2x32xf32>
    %328 = vector.extract_strided_slice %316 {offsets = [0, 64], sizes = [2, 32], strides = [1, 1]} : vector<2x96xf32> to vector<2x32xf32>
    %329 = vector.extract_strided_slice %317 {offsets = [0, 64], sizes = [2, 32], strides = [1, 1]} : vector<2x96xf32> to vector<2x32xf32>
    %330 = arith.addf %329, %188 : vector<2x32xf32>
    %331 = arith.mulf %326, %330 : vector<2x32xf32>
    %332 = arith.addf %328, %331 : vector<2x32xf32>
    %333 = math.tanh %332 : vector<2x32xf32>
    %334 = arith.subf %315, %333 : vector<2x32xf32>
    %335 = arith.mulf %327, %334 : vector<2x32xf32>
    %336 = arith.addf %333, %335 : vector<2x32xf32>
    %337 = vector.extract_strided_slice %184 {offsets = [14, 0], sizes = [2, 96], strides = [1, 1]} : vector<16x96xf32> to vector<2x96xf32>
    %cst_50 = arith.constant dense<0.000000e+00> : vector<2x96xf32>
    %338 = tpu.matmul %336, %185, %cst_50 {dimension_numbers = #tpu.dot_dimension_numbers<[1], [0], [0], [1], [0, 0, 1, 1], [], []>} : vector<2x32xf32>, vector<32x96xf32>, vector<2x96xf32> -> vector<2x96xf32>
    %339 = vector.extract_strided_slice %337 {offsets = [0, 0], sizes = [2, 64], strides = [1, 1]} : vector<2x96xf32> to vector<2x64xf32>
    %340 = vector.extract_strided_slice %338 {offsets = [0, 0], sizes = [2, 64], strides = [1, 1]} : vector<2x96xf32> to vector<2x64xf32>
    %341 = arith.addf %339, %340 : vector<2x64xf32>
    %342 = arith.negf %341 : vector<2x64xf32>
    %343 = math.exp %342 : vector<2x64xf32>
    %cst_51 = arith.constant 1.000000e+00 : f32
    %344 = vector.broadcast %cst_51 : f32 to vector<2x64xf32>
    %345 = arith.addf %344, %343 : vector<2x64xf32>
    %346 = arith.divf %344, %345 : vector<2x64xf32>
    %347 = vector.extract_strided_slice %346 {offsets = [0, 0], sizes = [2, 32], strides = [1, 1]} : vector<2x64xf32> to vector<2x32xf32>
    %348 = vector.extract_strided_slice %346 {offsets = [0, 32], sizes = [2, 32], strides = [1, 1]} : vector<2x64xf32> to vector<2x32xf32>
    %349 = vector.extract_strided_slice %337 {offsets = [0, 64], sizes = [2, 32], strides = [1, 1]} : vector<2x96xf32> to vector<2x32xf32>
    %350 = vector.extract_strided_slice %338 {offsets = [0, 64], sizes = [2, 32], strides = [1, 1]} : vector<2x96xf32> to vector<2x32xf32>
    %351 = arith.addf %350, %188 : vector<2x32xf32>
    %352 = arith.mulf %347, %351 : vector<2x32xf32>
    %353 = arith.addf %349, %352 : vector<2x32xf32>
    %354 = math.tanh %353 : vector<2x32xf32>
    %355 = arith.subf %336, %354 : vector<2x32xf32>
    %356 = arith.mulf %348, %355 : vector<2x32xf32>
    %357 = arith.addf %354, %356 : vector<2x32xf32>
    %358 = tpu.concatenate %210, %231, %252, %273, %294, %315, %336, %357 in 0 : vector<2x32xf32>, vector<2x32xf32>, vector<2x32xf32>, vector<2x32xf32>, vector<2x32xf32>, vector<2x32xf32>, vector<2x32xf32>, vector<2x32xf32> -> vector<16x32xf32>
    %c0_52 = arith.constant 0 : index
    %c0_53 = arith.constant 0 : index
    %359 = vector.load %arg9[%c0_52, %c0_53] : memref<32x2xf32, #tpu.memory_space<vmem>>, vector<32x2xf32>
    %cst_54 = arith.constant dense<0.000000e+00> : vector<16x2xf32>
    %360 = tpu.matmul %358, %359, %cst_54 {dimension_numbers = #tpu.dot_dimension_numbers<[1], [0], [0], [1], [0, 0, 1, 1], [], []>} : vector<16x32xf32>, vector<32x2xf32>, vector<16x2xf32> -> vector<16x2xf32>
    %c0_55 = arith.constant 0 : index
    %c0_56 = arith.constant 0 : index
    %361 = vector.load %arg10[%c0_55, %c0_56] : memref<1x2xf32, #tpu.memory_space<vmem>>, vector<1x2xf32>
    %362 = vector.broadcast %361 : vector<1x2xf32> to vector<16x2xf32>
    %363 = arith.addf %360, %362 : vector<16x2xf32>
    %c0_57 = arith.constant 0 : index
    %c0_58 = arith.constant 0 : index
    %364 = vector.load %arg11[%c0_57, %c0_58] : memref<16x2xf32, #tpu.memory_space<vmem>>, vector<16x2xf32>
    tpu.vector_store %arg11[%c0_57, %c0_58], %363 {strides = array<i32>} : memref<16x2xf32, #tpu.memory_space<vmem>>, vector<16x2xf32>,
    return
  }
}

</mosaic_0001>

<bundles_post_ra>
// kernel: model2_forward.1
= control target key start
LH: loop header
LB: loop body
LE: loop exit
PB: predicated region body
PF: predicated region fallthrough
CT: control target
= control target key end

     0   :  { %16 = vsyncpa [#allocation3], 0  ;;  %s2056_s0 = inlined_call_operand.vmem [shape: f32[16,32], index: 0, kind: input, shape index: {}]   ;;  %s2057_s1 = inlined_call_operand.vmem [shape: f32[32,96], index: 1, kind: input, shape index: {}]   ;;  %s2058_s2 = inlined_call_operand.vmem [shape: f32[32,96], index: 2, kind: input, shape index: {}]   ;;  %s2059_s3 = inlined_call_operand.vmem [shape: f32[1,96], index: 3, kind: input, shape index: {}]   ;;  %s2060_s4 = inlined_call_operand.vmem [shape: f32[1,32], index: 4, kind: input, shape index: {}]   ;;  %s2061_s5 = inlined_call_operand.hbm [shape: f32[32,96], index: 5, kind: input, shape index: {}]   ;;  %s2062_s6 = inlined_call_operand.hbm [shape: f32[32,96], index: 6, kind: input, shape index: {}]   ;;  %s2063_s7 = inlined_call_operand.vmem [shape: f32[1,96], index: 7, kind: input, shape index: {}]   ;;  %s2064_s8 = inlined_call_operand.vmem [shape: f32[1,32], index: 8, kind: input, shape index: {}]   ;;  %s2065_s9 = inlined_call_operand.vmem [shape: f32[32,2], index: 9, kind: input, shape index: {}]   ;;  %s2066_s10 = inlined_call_operand.vmem [shape: f32[1,2], index: 10, kind: input, shape index: {}]   ;;  %s2067_s11 = inlined_call_operand.vmem [shape: f32[16,2], index: 11, kind: output, shape index: {}]  }
   0x1   :  { %s32_s19 = sshll.u32 %s2061_s5, 4  ;;  %s33_s19 = int_to_ptr.hbm [resolvable:$true] %s32_s19 }
   0x2   :  { %17 = vsyncpa [#allocation5], 0  ;;  %s1632_s20 = smov [#allocation2]   ;;  %s45_s24 = sshll.u32 %s2062_s6, 4  ;;  %s46_s24 = int_to_ptr.hbm [resolvable:$true] %s45_s24 }
   0x3   :  { %s34_s21 = sshll.u32 %s1632_s20, 4  ;;  %s1633_s25 = smov 128   ;;  %s35_s21 = int_to_ptr.vmem [resolvable:$true] %s34_s21 }
   0x4   :  { %s1634_s26 = smov 8   ;;  %s1635_s27 = smov [#allocation4]  }
   0x5   :  { %40 = dma.hbm_to_vmem [thread:$0]  %s33_s19, 512, %s35_s21, [#allocation3], %s1633_s25, %s1633_s25, %s1634_s26  }
   0x6   :  { %s47_s28 = sshll.u32 %s1635_s27, 4  ;;  %s48_s28 = int_to_ptr.vmem [resolvable:$true] %s47_s28 }
   0x7   :  { %53 = dma.hbm_to_vmem [thread:$0]  %s46_s24, 512, %s48_s28, [#allocation5], %s1633_s25, %s1633_s25, %s1634_s26  }
   0x8   :  { %1628 = dma.done.wait [#allocation3], 512  }
   0x9   :  { %1629 = vsyncadd [#allocation3], 4294966784 }
   0xa   :  { %1630 = dma.done.wait [#allocation5], 512  }
   0xb   :  { %1631 = vsyncadd [#allocation5], 4294966784  ;;  %v75_v0 = vld [vmem:[%s2057_s1 + $0x18] sm:$0xff]  ;;  %v74_v1 = vld [vmem:[%s2057_s1 + $0x10] sm:$0xff]  ;;  %vm80_vm0 = vcmask 261120   ;;  %s1636_s27 = smov 64  }
   0xc   :  { %1467 = vmatpush.msra.mxu1 %v75_v0  ;;  %99 = vmatpush.msra.mxu0 %v75_v0  ;;  %v113_v2 = vld [vmem:[%s2058_s2 + $0x18] sm:$0xff]  ;;  %v73_v3 = vld [vmem:[%s2057_s1 + $0x8] sm:$0xff]  ;;  %v72_v4 = vld [vmem:[%s2057_s1] sm:$0xff]  ;;  %v1637_v11 = vmov 0.0   ;;  %s1639_s5 = smov 32  }
   0xd   :  { %203 = vmatpush.msra.mxu2 %v113_v2  ;;  %280 = vmatpush.msra.mxu3 %v113_v2  ;;  %v71_v5 = vld [vmem:[%s2056_s0 + $0x8] sm:$0xff]  ;;  %v112_v6 = vld [vmem:[%s2058_s2 + $0x10] sm:$0xff]  ;;  %v1479_v7 = vld [vmem:[%s2060_s4] ss:$0 sm:$0xff] }
   0xe   :  { %1468 = vmatpush.msra.mxu1 %v74_v1  ;;  %100 = vmatpush.msra.mxu0 %v74_v1  ;;  %v111_v8 = vld [vmem:[%s2058_s2 + $0x8] sm:$0xff]  ;;  %v70_v9 = vld [vmem:[%s2056_s0] sm:$0xff] }
   0xf   :  { %204 = vmatpush.msra.mxu2 %v112_v6  ;;  %281 = vmatpush.msra.mxu3 %v112_v6  ;;  %v110_v10 = vld [vmem:[%s2058_s2] sm:$0xff] }
  0x10   :  { %1469 = vmatpush.msra.mxu1 %v73_v3  ;;  %101 = vmatpush.msra.mxu0 %v73_v3  ;;  %v1480_v12 = vld [vmem:[%s2059_s3] ss:$0 sm:$0xff]  ;;  %s1638_s3 = smov 96  }
  0x11   :  { %160 = vrot.lane.b32.xlu0 %v1479_v7, %s1636_s27  ;;  %205 = vmatpush.msra.mxu2 %v111_v8 }
  0x12   :  { %1470 = vmatpush.msra.mxu1 %v72_v4  ;;  %102 = vmatpush.msra.mxu0 %v72_v4 }
  0x13   :  { %1432 = vmatmul.msk.f32.vlgmr.msra.gmra.mxu1 %vm80_vm0, %v71_v5  ;;  %1431 = vmatmul.msk.f32.vlgmr.msra.gmra.mxu0 %vm80_vm0, %v70_v9 }
  0x14   :  { %132 = vmatpush.msrb.mxu1 %v113_v2  ;;  %206 = vmatpush.msra.mxu2 %v110_v10 }
  0x15   :  { %282 = vmatpush.msra.mxu3 %v111_v8  ;;  %583 = vmatpush.msrb.mxu0 %v113_v2 }
  0x16   :  { %434 = vmatpush.msrb.mxu2 %v113_v2  ;;  %133 = vmatpush.msrb.mxu1 %v112_v6 }
  0x17   :  { %283 = vmatpush.msra.mxu3 %v110_v10  ;;  %584 = vmatpush.msrb.mxu0 %v112_v6 }
  0x18   :  { %435 = vmatpush.msrb.mxu2 %v112_v6  ;;  %134 = vmatpush.msrb.mxu1 %v111_v8 }
  0x19   :  { %506 = vmatpush.msrb.mxu3 %v113_v2  ;;  %585 = vmatpush.msrb.mxu0 %v111_v8 }
  0x1a   :  { %436 = vmatpush.msrb.mxu2 %v111_v8  ;;  %135 = vmatpush.msrb.mxu1 %v110_v10 }
  0x1b   :  { %507 = vmatpush.msrb.mxu3 %v112_v6  ;;  %136 = vmatmul.f32.vlgmr.msrb.gmra.mxu1 %v1637_v11 }
  0x1c   :  { %437 = vmatpush.msrb.mxu2 %v110_v10  ;;  %357 = vmatpush.msra.mxu1 %v113_v2 }
  0x1d   :  { %508 = vmatpush.msrb.mxu3 %v111_v8  ;;  %586 = vmatpush.msrb.mxu0 %v110_v10 }
  0x1e   :  { %358 = vmatpush.msra.mxu1 %v112_v6 }
  0x1f   :  { %509 = vmatpush.msrb.mxu3 %v110_v10 }
  0x20   :  { %359 = vmatpush.msra.mxu1 %v111_v8 }
  0x22   :  { %360 = vmatpush.msra.mxu1 %v110_v10 }
  0x24   :  { %660 = vmatpush.msrb.mxu1 %v113_v2 }
  0x26   :  { %661 = vmatpush.msrb.mxu1 %v112_v6 }
  0x28   :  { %662 = vmatpush.msrb.mxu1 %v111_v8 }
  0x2a   :  { %663 = vmatpush.msrb.mxu1 %v110_v10 }
  0x83   :  { %v1748_v15 = vpop.permute.xlu0 %160 }
  0x90   :  { %v107_v13 = vpop.f32.mrf.mxu1  ;;  %v104_v18 = vpop.f32.mrf.mxu0 }
  0x91   :  { %v1746_v14 = vadd.f32 %v1480_v12, %v107_v13  ;;  %v1752_v19 = vadd.f32 %v1480_v12, %v104_v18 }
  0x98   :  { %v137_v16 = vpop.f32.mrf.mxu1 }
  0x99   :  { %v163_v17 = vadd.f32 %v1748_v15, %v137_v16  ;;  %v140_v20 = vadd.f32 %v137_v16, %v1752_v19 }
  0x9b   :  { %165 = vrot.lane.b32.xlu0 %v163_v17, %s1636_s27  ;;  %v1433_v21 = vmul.f32 -1.442695, %v140_v20 }
  0x9d   :  { %1484 = vpow2.f32 %v1433_v21 }
  0xa3   :  { %v1485_v22 = vpop.eup %1484 }
  0xa4   :  { %v144_v23 = vadd.f32 1.0, %v1485_v22 }
  0xa6   :  { %1486 = vrcp.f32 %v144_v23  ;;  %v156_v29 = vand.u32 2147483648, %v144_v23  ;;  %vm150_vm2 = vweird.f32 %v144_v23  ;;  %v154_v30 = vand.u32 2147483647, %v144_v23 }
  0xa8   :  { %v157_v32 = vor.u32 1.1754944e-38, %v156_v29  ;;  %vm155_vm4 = vcmp.eq.f32.partialorder %v154_v30, 8.507059e+37 }
  0xac   :  { %v1487_v24 = vpop.eup %1486 }
  0xad   :  { %v146_v25 = vmul.f32 %v1487_v24, %v144_v23  ;;  %vm151_vm1 = vweird.f32 %v1487_v24 }
  0xae   :  { %vm152_vm3 = vmor %vm150_vm2, %vm151_vm1 }
  0xaf   :  { %v147_v26 = vsub.f32 1.0, %v146_v25 }
  0xb1   :  { %v148_v27 = vmul.f32 %v1487_v24, %v147_v26 }
  0xb3   :  { %v149_v28 = vadd.f32 %v1487_v24, %v148_v27 }
  0xb5   :  { %v153_v31 = vsel %vm152_vm3, %v1487_v24, %v149_v28 }
  0xb6   :  { %v158_v34 = vsel %vm155_vm4, %v157_v32, %v153_v31 }
 0x10d   :  { %v166_v33 = vpop.permute.xlu0 %165 }
 0x10e   :  { %v168_v35 = vmul.f32 %v166_v33, %v158_v34 }
 0x110   :  { %170 = vrot.lane.b32.xlu1 %v168_v35, %s1636_s27 }
 0x182   :  { %v171_v36 = vpop.permute.xlu1 %170 }
 0x183   :  { %v173_v37 = vadd.f32 %v171_v36, %v1752_v19 }
 0x185   :  { %1488 = vtanh.f32 %v173_v37 }
 0x18b   :  { %v1489_v38 = vpop.eup %1488 }
 0x18c   :  { %v175_v39 = vsub.f32 0.0, %v1489_v38 }
 0x18e   :  { %177 = vrot.lane.b32.xlu1 %v175_v39, %s1638_s3 }
 0x200   :  { %v178_v40 = vpop.permute.xlu1 %177 }
 0x201   :  { %v180_v41 = vmul.f32 %v178_v40, %v158_v34 }
 0x203   :  { %182 = vrot.lane.b32.xlu2 %v180_v41, %s1639_s5 }
 0x25d   :  { %v183_v42 = vpop.permute.xlu2 %182 }
 0x25e   :  { %v1759_v43 = vadd.f32 %v1489_v38, %v183_v42 }
 0x260   :  { %187 = vrot.lane.b32.xlu2 %v1759_v43, %s1636_s27 }
 0x2ba   :  { %v188_v44 = vpop.permute.xlu2 %187 }
 0x2bb   :  { %1434 = vmatmul.msk.f32.vlgmr.msra.gmra.mxu2 %vm80_vm0, %v188_v44 }
 0x33e   :  { %v208_v45 = vpop.f32.mrf.mxu2 }
 0x33f   :  { %v234_v46 = vadd.f32 %v208_v45, %v1748_v15  ;;  %v212_v48 = vrot.slane %v208_v45, 6 }
 0x341   :  { %v236_v47 = vrot.slane %v234_v46, 6  ;;  %v214_v49 = vadd.f32 %v212_v48, %v1752_v19 }
 0x343   :  { %237 = vrot.lane.b32.xlu0 %v236_v47, %s1636_s27  ;;  %v1435_v50 = vmul.f32 -1.442695, %v214_v49 }
 0x345   :  { %1490 = vpow2.f32 %v1435_v50 }
 0x34b   :  { %v1491_v51 = vpop.eup %1490 }
 0x34c   :  { %v218_v52 = vadd.f32 1.0, %v1491_v51 }
 0x34e   :  { %1492 = vrcp.f32 %v218_v52  ;;  %v230_v58 = vand.u32 2147483648, %v218_v52  ;;  %vm224_vm6 = vweird.f32 %v218_v52  ;;  %v228_v59 = vand.u32 2147483647, %v218_v52 }
 0x350   :  { %v231_v61 = vor.u32 1.1754944e-38, %v230_v58  ;;  %vm229_vm8 = vcmp.eq.f32.partialorder %v228_v59, 8.507059e+37 }
 0x354   :  { %v1493_v53 = vpop.eup %1492 }
 0x355   :  { %v220_v54 = vmul.f32 %v1493_v53, %v218_v52  ;;  %vm225_vm5 = vweird.f32 %v1493_v53 }
 0x356   :  { %vm226_vm7 = vmor %vm224_vm6, %vm225_vm5  ;;  %vm719_vm6 = vcmask 1041408  }
 0x357   :  { %v221_v55 = vsub.f32 1.0, %v220_v54 }
 0x359   :  { %v222_v56 = vmul.f32 %v1493_v53, %v221_v55 }
 0x35b   :  { %v223_v57 = vadd.f32 %v1493_v53, %v222_v56 }
 0x35d   :  { %v227_v60 = vsel %vm226_vm7, %v1493_v53, %v223_v57  ;;  %vm721_vm7 = vcmask 1043456  }
 0x35e   :  { %v232_v63 = vsel %vm229_vm8, %v231_v61, %v227_v60  ;;  %vm723_vm8 = vcmask 1045504  }
 0x3b5   :  { %v238_v62 = vpop.permute.xlu0 %237 }
 0x3b6   :  { %v240_v0 = vmul.f32 %v238_v62, %v232_v63 }
 0x3b8   :  { %242 = vrot.lane.b32.xlu1 %v240_v0, %s1636_s27 }
 0x42a   :  { %v243_v1 = vpop.permute.xlu1 %242 }
 0x42b   :  { %v245_v2 = vadd.f32 %v243_v1, %v1752_v19 }
 0x42d   :  { %1494 = vtanh.f32 %v245_v2 }
 0x433   :  { %v1495_v3 = vpop.eup %1494 }
 0x434   :  { %v248_v4 = vrot.slane %v1495_v3, 2 }
 0x436   :  { %v250_v5 = vsub.f32 %v1759_v43, %v248_v4 }
 0x438   :  { %v252_v6 = vrot.slane %v250_v5, 6 }
 0x43a   :  { %253 = vrot.lane.b32.xlu2 %v252_v6, %s1638_s3 }
 0x494   :  { %v254_v7 = vpop.permute.xlu2 %253 }
 0x495   :  { %v256_v8 = vmul.f32 %v254_v7, %v232_v63 }
 0x497   :  { %258 = vrot.lane.b32.xlu0 %v256_v8, %s1639_s5 }
 0x509   :  { %v259_v9 = vpop.permute.xlu0 %258 }
 0x50a   :  { %v1772_v10 = vadd.f32 %v1495_v3, %v259_v9 }
 0x50c   :  { %v263_v12 = vrot.slane %v1772_v10, 2 }
 0x50e   :  { %264 = vrot.lane.b32.xlu1 %v263_v12, %s1636_s27 }
 0x580   :  { %v265_v13 = vpop.permute.xlu1 %264 }
 0x581   :  { %1436 = vmatmul.msk.f32.vlgmr.msra.gmra.mxu3 %vm80_vm0, %v265_v13 }
 0x604   :  { %v285_v16 = vpop.f32.mrf.mxu3 }
 0x605   :  { %v311_v17 = vadd.f32 %v285_v16, %v1748_v15  ;;  %v289_v20 = vrot.slane %v285_v16, 4 }
 0x607   :  { %v313_v18 = vrot.slane %v311_v17, 4  ;;  %v291_v21 = vadd.f32 %v289_v20, %v1752_v19 }
 0x609   :  { %314 = vrot.lane.b32.xlu2 %v313_v18, %s1636_s27  ;;  %v1437_v22 = vmul.f32 -1.442695, %v291_v21 }
 0x60b   :  { %1496 = vpow2.f32 %v1437_v22 }
 0x611   :  { %v1497_v23 = vpop.eup %1496 }
 0x612   :  { %v295_v24 = vadd.f32 1.0, %v1497_v23 }
 0x614   :  { %1498 = vrcp.f32 %v295_v24  ;;  %v307_v30 = vand.u32 2147483648, %v295_v24  ;;  %vm301_vm10 = vweird.f32 %v295_v24  ;;  %v305_v31 = vand.u32 2147483647, %v295_v24 }
 0x616   :  { %v308_v33 = vor.u32 1.1754944e-38, %v307_v30  ;;  %vm306_vm12 = vcmp.eq.f32.partialorder %v305_v31, 8.507059e+37 }
 0x61a   :  { %v1499_v25 = vpop.eup %1498 }
 0x61b   :  { %v297_v26 = vmul.f32 %v1499_v25, %v295_v24  ;;  %vm302_vm9 = vweird.f32 %v1499_v25 }
 0x61c   :  { %vm303_vm11 = vmor %vm301_vm10, %vm302_vm9 }
 0x61d   :  { %v298_v27 = vsub.f32 1.0, %v297_v26 }
 0x61f   :  { %v299_v28 = vmul.f32 %v1499_v25, %v298_v27 }
 0x621   :  { %v300_v29 = vadd.f32 %v1499_v25, %v299_v28 }
 0x623   :  { %v304_v32 = vsel %vm303_vm11, %v1499_v25, %v300_v29 }
 0x624   :  { %v309_v35 = vsel %vm306_vm12, %v308_v33, %v304_v32 }
 0x663   :  { %v315_v34 = vpop.permute.xlu2 %314 }
 0x664   :  { %v317_v36 = vmul.f32 %v315_v34, %v309_v35 }
 0x666   :  { %319 = vrot.lane.b32.xlu0 %v317_v36, %s1636_s27 }
 0x6d8   :  { %v320_v37 = vpop.permute.xlu0 %319 }
 0x6d9   :  { %v322_v38 = vadd.f32 %v320_v37, %v1752_v19 }
 0x6db   :  { %1500 = vtanh.f32 %v322_v38 }
 0x6e1   :  { %v1501_v39 = vpop.eup %1500 }
 0x6e2   :  { %v325_v40 = vrot.slane %v1501_v39, 2 }
 0x6e4   :  { %v327_v41 = vsub.f32 %v1772_v10, %v325_v40 }
 0x6e6   :  { %v329_v42 = vrot.slane %v327_v41, 6 }
 0x6e8   :  { %330 = vrot.lane.b32.xlu1 %v329_v42, %s1638_s3 }
 0x75a   :  { %v331_v44 = vpop.permute.xlu1 %330 }
 0x75b   :  { %v333_v45 = vmul.f32 %v331_v44, %v309_v35 }
 0x75d   :  { %335 = vrot.lane.b32.xlu2 %v333_v45, %s1639_s5 }
 0x7b7   :  { %v336_v46 = vpop.permute.xlu2 %335 }
 0x7b8   :  { %v1785_v47 = vadd.f32 %v1501_v39, %v336_v46 }
 0x7ba   :  { %v340_v48 = vrot.slane %v1785_v47, 4 }
 0x7bc   :  { %341 = vrot.lane.b32.xlu0 %v340_v48, %s1636_s27  ;;  %v720_v48 = vsel %vm719_vm6, %v1759_v43, %v1772_v10 }
 0x82e   :  { %v342_v49 = vpop.permute.xlu0 %341 }
 0x82f   :  { %1438 = vmatmul.msk.f32.vlgmr.msra.gmra.mxu1 %vm80_vm0, %v342_v49  ;;  %v722_v49 = vsel %vm721_vm7, %v720_v48, %v1785_v47 }
 0x8ac   :  { %v362_v50 = vpop.f32.mrf.mxu1 }
 0x8ad   :  { %v388_v51 = vadd.f32 %v362_v50, %v1748_v15  ;;  %v366_v53 = vrot.slane %v362_v50, 2 }
 0x8af   :  { %v390_v52 = vrot.slane %v388_v51, 2  ;;  %v368_v54 = vadd.f32 %v366_v53, %v1752_v19  ;;  %v731_v51 = vld [vmem:[#allocation2 + $0x18] sm:$0xff]  ;;  %v729_v53 = vld [vmem:[#allocation2 + $0x8] sm:$0xff] }
 0x8b0   :  { %758 = vmatpush.msra.mxu2 %v731_v51 }
 0x8b1   :  { %391 = vrot.lane.b32.xlu1 %v390_v52, %s1636_s27  ;;  %v1439_v55 = vmul.f32 -1.442695, %v368_v54  ;;  %v730_v52 = vld [vmem:[#allocation2 + $0x10] sm:$0xff]  ;;  %v728_v54 = vld [vmem:[#allocation2] sm:$0xff] }
 0x8b2   :  { %759 = vmatpush.msra.mxu2 %v730_v52 }
 0x8b3   :  { %1502 = vpow2.f32 %v1439_v55 }
 0x8b4   :  { %760 = vmatpush.msra.mxu2 %v729_v53 }
 0x8b6   :  { %761 = vmatpush.msra.mxu2 %v728_v54 }
 0x8b9   :  { %v1503_v56 = vpop.eup %1502 }
 0x8ba   :  { %v372_v57 = vadd.f32 1.0, %v1503_v56 }
 0x8bc   :  { %1504 = vrcp.f32 %v372_v57  ;;  %v384_v63 = vand.u32 2147483648, %v372_v57  ;;  %vm378_vm14 = vweird.f32 %v372_v57  ;;  %v382_v0 = vand.u32 2147483647, %v372_v57 }
 0x8be   :  { %v385_v2 = vor.u32 1.1754944e-38, %v384_v63  ;;  %vm383_vm1 = vcmp.eq.f32.partialorder %v382_v0, 8.507059e+37 }
 0x8c2   :  { %v1505_v58 = vpop.eup %1504 }
 0x8c3   :  { %v374_v59 = vmul.f32 %v1505_v58, %v372_v57  ;;  %vm379_vm13 = vweird.f32 %v1505_v58  ;;  %v1819_v57 = vld [vmem:[#allocation4 + $0x18] sm:$0xff] }
 0x8c4   :  { %vm380_vm15 = vmor %vm378_vm14, %vm379_vm13  ;;  %788 = vmatpush.msra.mxu3 %v1819_v57  ;;  %859 = vmatpush.msra.mxu0 %v1819_v57 }
 0x8c5   :  { %v375_v60 = vsub.f32 1.0, %v374_v59  ;;  %v1825_v59 = vld [vmem:[#allocation4 + $0x8] sm:$0xff]  ;;  %936 = vmatpush.msra.mxu1 %v1819_v57 }
 0x8c7   :  { %v376_v61 = vmul.f32 %v1505_v58, %v375_v60  ;;  %v1831_v60 = vld [vmem:[#allocation4] sm:$0xff] }
 0x8c9   :  { %v377_v62 = vadd.f32 %v1505_v58, %v376_v61  ;;  %v1482_v61 = vld [vmem:[%s2064_s8] ss:$0 sm:$0xff] }
 0x8cb   :  { %v381_v1 = vsel %vm380_vm15, %v1505_v58, %v377_v62  ;;  %v1821_v58 = vld [vmem:[#allocation4 + $0x10] sm:$0xff] }
 0x8cc   :  { %v386_v4 = vsel %vm383_vm1, %v385_v2, %v381_v1  ;;  %789 = vmatpush.msra.mxu3 %v1821_v58  ;;  %860 = vmatpush.msra.mxu0 %v1821_v58 }
 0x8cd   :  { %937 = vmatpush.msra.mxu1 %v1821_v58 }
 0x8ce   :  { %790 = vmatpush.msra.mxu3 %v1825_v59  ;;  %861 = vmatpush.msra.mxu0 %v1825_v59 }
 0x8cf   :  { %938 = vmatpush.msra.mxu1 %v1825_v59 }
 0x8d0   :  { %791 = vmatpush.msra.mxu3 %v1831_v60  ;;  %862 = vmatpush.msra.mxu0 %v1831_v60 }
 0x8d1   :  { %939 = vmatpush.msra.mxu1 %v1831_v60 }
 0x923   :  { %v392_v3 = vpop.permute.xlu1 %391 }
 0x924   :  { %v394_v5 = vmul.f32 %v392_v3, %v386_v4 }
 0x926   :  { %396 = vrot.lane.b32.xlu2 %v394_v5, %s1636_s27 }
 0x980   :  { %v397_v6 = vpop.permute.xlu2 %396 }
 0x981   :  { %v399_v7 = vadd.f32 %v397_v6, %v1752_v19 }
 0x983   :  { %1506 = vtanh.f32 %v399_v7 }
 0x989   :  { %v1507_v8 = vpop.eup %1506 }
 0x98a   :  { %v402_v9 = vrot.slane %v1507_v8, 2 }
 0x98c   :  { %v404_v12 = vsub.f32 %v1785_v47, %v402_v9 }
 0x98e   :  { %v406_v13 = vrot.slane %v404_v12, 6 }
 0x990   :  { %407 = vrot.lane.b32.xlu0 %v406_v13, %s1638_s3 }
 0xa02   :  { %v408_v16 = vpop.permute.xlu0 %407 }
 0xa03   :  { %v410_v17 = vmul.f32 %v408_v16, %v386_v4 }
 0xa05   :  { %412 = vrot.lane.b32.xlu1 %v410_v17, %s1639_s5 }
 0xa77   :  { %v413_v18 = vpop.permute.xlu1 %412 }
 0xa78   :  { %v415_v20 = vadd.f32 %v1507_v8, %v413_v18 }
 0xa7a   :  { %v417_v21 = vrot.slane %v415_v20, 6  ;;  %v724_v50 = vsel %vm723_vm8, %v722_v49, %v415_v20 }
 0xa7c   :  { %418 = vrot.lane.b32.xlu2 %v417_v21, %s1636_s27 }
 0xad6   :  { %v419_v22 = vpop.permute.xlu2 %418 }
 0xad7   :  { %1440 = vmatmul.msk.f32.vlgmr.msrb.gmra.mxu2 %vm80_vm0, %v419_v22 }
 0xad8   :  { %1239 = vmatpush.msrb.mxu2 %v1819_v57 }
 0xada   :  { %1240 = vmatpush.msrb.mxu2 %v1821_v58 }
 0xadc   :  { %1241 = vmatpush.msrb.mxu2 %v1825_v59 }
 0xade   :  { %1242 = vmatpush.msrb.mxu2 %v1831_v60 }
 0xb5a   :  { %v439_v19 = vpop.f32.mrf.mxu2 }
 0xb5b   :  { %v462_v23 = vadd.f32 %v439_v19, %v1748_v15  ;;  %v442_v24 = vadd.f32 %v439_v19, %v1746_v14 }
 0xb5d   :  { %464 = vrot.lane.b32.xlu0 %v462_v23, %s1636_s27  ;;  %v1441_v25 = vmul.f32 -1.442695, %v442_v24 }
 0xb5f   :  { %1508 = vpow2.f32 %v1441_v25 }
 0xb65   :  { %v1509_v26 = vpop.eup %1508 }
 0xb66   :  { %v446_v27 = vadd.f32 1.0, %v1509_v26 }
 0xb68   :  { %1510 = vrcp.f32 %v446_v27  ;;  %v458_v33 = vand.u32 2147483648, %v446_v27  ;;  %vm452_vm3 = vweird.f32 %v446_v27  ;;  %v456_v34 = vand.u32 2147483647, %v446_v27 }
 0xb6a   :  { %v459_v36 = vor.u32 1.1754944e-38, %v458_v33  ;;  %vm457_vm5 = vcmp.eq.f32.partialorder %v456_v34, 8.507059e+37 }
 0xb6e   :  { %v1511_v28 = vpop.eup %1510 }
 0xb6f   :  { %v448_v29 = vmul.f32 %v1511_v28, %v446_v27  ;;  %vm453_vm2 = vweird.f32 %v1511_v28 }
 0xb70   :  { %vm454_vm4 = vmor %vm452_vm3, %vm453_vm2 }
 0xb71   :  { %v449_v30 = vsub.f32 1.0, %v448_v29 }
 0xb73   :  { %v450_v31 = vmul.f32 %v1511_v28, %v449_v30 }
 0xb75   :  { %v451_v32 = vadd.f32 %v1511_v28, %v450_v31 }
 0xb77   :  { %v455_v35 = vsel %vm454_vm4, %v1511_v28, %v451_v32 }
 0xb78   :  { %v460_v38 = vsel %vm457_vm5, %v459_v36, %v455_v35 }
 0xbcf   :  { %v465_v37 = vpop.permute.xlu0 %464 }
 0xbd0   :  { %v467_v39 = vmul.f32 %v465_v37, %v460_v38 }
 0xbd2   :  { %469 = vrot.lane.b32.xlu1 %v467_v39, %s1636_s27 }
 0xc44   :  { %v470_v40 = vpop.permute.xlu1 %469 }
 0xc45   :  { %v472_v41 = vadd.f32 %v470_v40, %v1746_v14 }
 0xc47   :  { %1512 = vtanh.f32 %v472_v41 }
 0xc4d   :  { %v1513_v42 = vpop.eup %1512 }
 0xc4e   :  { %v475_v44 = vrot.slane %v1513_v42, 2 }
 0xc50   :  { %v477_v45 = vsub.f32 %v415_v20, %v475_v44 }
 0xc52   :  { %v479_v46 = vrot.slane %v477_v45, 6 }
 0xc54   :  { %480 = vrot.lane.b32.xlu2 %v479_v46, %s1638_s3 }
 0xc5c   :  { %738 = vrot.lane.b32.xlu2 %v724_v50, %s1636_s27 }
 0xcae   :  { %v481_v55 = vpop.permute.xlu2 %480 }
 0xcaf   :  { %v483_v56 = vmul.f32 %v481_v55, %v460_v38 }
 0xcb1   :  { %485 = vrot.lane.b32.xlu0 %v483_v56, %s1639_s5 }
 0xcb6   :  { %v739_v43 = vpop.permute.xlu2 %738 }
 0xcb7   :  { %1448 = vmatmul.msk.f32.vlgmr.msra.gmra.mxu2 %vm80_vm0, %v739_v43 }
 0xcb9   :  { %816 = vrot.lane.b32.xlu0 %v1482_v61, %s1636_s27 }
 0xd23   :  { %v486_v10 = vpop.permute.xlu0 %485 }
 0xd24   :  { %v1815_v47 = vadd.f32 %v1513_v42, %v486_v10 }
 0xd26   :  { %490 = vrot.lane.b32.xlu1 %v1815_v47, %s1636_s27 }
 0xd2b   :  { %v1859_v2 = vpop.permute.xlu0 %816 }
 0xd3a   :  { %v763_v5 = vpop.f32.mrf.mxu2 }
 0xd98   :  { %v491_v62 = vpop.permute.xlu1 %490 }
 0xd99   :  { %1442 = vmatmul.msk.f32.vlgmr.msrb.gmra.mxu3 %vm80_vm0, %v491_v62 }
 0xd9a   :  { %1013 = vmatpush.msrb.mxu3 %v1819_v57 }
 0xd9c   :  { %1014 = vmatpush.msrb.mxu3 %v1821_v58 }
 0xd9e   :  { %1015 = vmatpush.msrb.mxu3 %v1825_v59 }
 0xda0   :  { %1016 = vmatpush.msrb.mxu3 %v1831_v60 }
 0xda1   :  { %792 = vmatmul.f32.vlgmr.msra.gmra.mxu3 %v1637_v11  ;;  %v1866_v11 = vld [vmem:[%s2063_s7] ss:$0 sm:$0xff] }
 0xda2   :  { %1316 = vmatpush.msra.mxu3 %v1819_v57  ;;  %v1869_v6 = vadd.f32 %v1866_v11, %v763_v5 }
 0xda4   :  { %1317 = vmatpush.msra.mxu3 %v1821_v58 }
 0xda6   :  { %1318 = vmatpush.msra.mxu3 %v1825_v59 }
 0xda8   :  { %1319 = vmatpush.msra.mxu3 %v1831_v60 }
 0xe1c   :  { %v511_v63 = vpop.f32.mrf.mxu3 }
 0xe1d   :  { %v537_v0 = vadd.f32 %v511_v63, %v1748_v15  ;;  %v515_v12 = vrot.slane %v511_v63, 6 }
 0xe1f   :  { %v539_v1 = vrot.slane %v537_v0, 6  ;;  %v517_v16 = vadd.f32 %v515_v12, %v1746_v14 }
 0xe21   :  { %540 = vrot.lane.b32.xlu1 %v539_v1, %s1636_s27  ;;  %v1443_v17 = vmul.f32 -1.442695, %v517_v16 }
 0xe24   :  { %v793_v3 = vpop.f32.mrf.mxu3 }
 0xe25   :  { %v819_v4 = vadd.f32 %v1859_v2, %v793_v3  ;;  %v796_v7 = vadd.f32 %v793_v3, %v1869_v6 }
 0xe27   :  { %821 = vrot.lane.b32.xlu2 %v819_v4, %s1636_s27  ;;  %v1450_v8 = vmul.f32 -1.442695, %v796_v7 }
 0xe29   :  { %1514 = vpow2.f32 %v1450_v8 }
 0xe2f   :  { %v1515_v9 = vpop.eup %1514 }
 0xe30   :  { %v800_v13 = vadd.f32 1.0, %v1515_v9 }
 0xe32   :  { %1516 = vrcp.f32 %v800_v13  ;;  %v812_v25 = vand.u32 2147483648, %v800_v13  ;;  %vm806_vm10 = vweird.f32 %v800_v13  ;;  %v810_v26 = vand.u32 2147483647, %v800_v13 }
 0xe33   :  { %1518 = vpow2.f32 %v1443_v17 }
 0xe34   :  { %v813_v29 = vor.u32 1.1754944e-38, %v812_v25  ;;  %vm811_vm12 = vcmp.eq.f32.partialorder %v810_v26, 8.507059e+37 }
 0xe38   :  { %v1517_v18 = vpop.eup %1516 }
 0xe39   :  { %v802_v20 = vmul.f32 %v1517_v18, %v800_v13  ;;  %v1519_v21 = vpop.eup %1518  ;;  %vm807_vm9 = vweird.f32 %v1517_v18 }
 0xe3a   :  { %v521_v19 = vadd.f32 1.0, %v1519_v21  ;;  %vm808_vm11 = vmor %vm806_vm10, %vm807_vm9 }
 0xe3b   :  { %v803_v22 = vsub.f32 1.0, %v802_v20 }
 0xe3c   :  { %1520 = vrcp.f32 %v521_v19  ;;  %v533_v37 = vand.u32 2147483648, %v521_v19  ;;  %vm527_vm14 = vweird.f32 %v521_v19  ;;  %v531_v38 = vand.u32 2147483647, %v521_v19 }
 0xe3d   :  { %v804_v23 = vmul.f32 %v1517_v18, %v803_v22 }
 0xe3e   :  { %v534_v40 = vor.u32 1.1754944e-38, %v533_v37  ;;  %vm532_vm1 = vcmp.eq.f32.partialorder %v531_v38, 8.507059e+37 }
 0xe3f   :  { %v805_v24 = vadd.f32 %v1517_v18, %v804_v23 }
 0xe41   :  { %v809_v28 = vsel %vm808_vm11, %v1517_v18, %v805_v24 }
 0xe42   :  { %v1521_v27 = vpop.eup %1520  ;;  %v814_v31 = vsel %vm811_vm12, %v813_v29, %v809_v28 }
 0xe43   :  { %v523_v30 = vmul.f32 %v1521_v27, %v521_v19  ;;  %vm528_vm13 = vweird.f32 %v1521_v27 }
 0xe44   :  { %vm529_vm15 = vmor %vm527_vm14, %vm528_vm13 }
 0xe45   :  { %v524_v34 = vsub.f32 1.0, %v523_v30 }
 0xe47   :  { %v525_v35 = vmul.f32 %v1521_v27, %v524_v34 }
 0xe49   :  { %v526_v36 = vadd.f32 %v1521_v27, %v525_v35 }
 0xe4b   :  { %v530_v39 = vsel %vm529_vm15, %v1521_v27, %v526_v36 }
 0xe4c   :  { %v535_v42 = vsel %vm532_vm1, %v534_v40, %v530_v39 }
 0xe81   :  { %v822_v32 = vpop.permute.xlu2 %821 }
 0xe82   :  { %v824_v33 = vmul.f32 %v822_v32, %v814_v31 }
 0xe84   :  { %826 = vrot.lane.b32.xlu1 %v824_v33, %s1636_s27 }
 0xe93   :  { %v541_v41 = vpop.permute.xlu1 %540 }
 0xe94   :  { %v543_v44 = vmul.f32 %v541_v41, %v535_v42 }
 0xe96   :  { %545 = vrot.lane.b32.xlu0 %v543_v44, %s1636_s27 }
 0xef6   :  { %v827_v45 = vpop.permute.xlu1 %826 }
 0xef7   :  { %v829_v46 = vadd.f32 %v827_v45, %v1869_v6 }
 0xef9   :  { %1522 = vtanh.f32 %v829_v46 }
 0xeff   :  { %v1523_v48 = vpop.eup %1522 }
 0xf00   :  { %v831_v49 = vsub.f32 0.0, %v1523_v48 }
 0xf02   :  { %833 = vrot.lane.b32.xlu0 %v831_v49, %s1638_s3 }
 0xf08   :  { %v546_v50 = vpop.permute.xlu0 %545 }
 0xf09   :  { %v548_v51 = vadd.f32 %v546_v50, %v1746_v14 }
 0xf0b   :  { %1524 = vtanh.f32 %v548_v51 }
 0xf11   :  { %v1525_v52 = vpop.eup %1524 }
 0xf12   :  { %v551_v53 = vrot.slane %v1525_v52, 2 }
 0xf14   :  { %v553_v54 = vsub.f32 %v1815_v47, %v551_v53 }
 0xf16   :  { %v555_v55 = vrot.slane %v553_v54, 6 }
 0xf18   :  { %556 = vrot.lane.b32.xlu2 %v555_v55, %s1638_s3 }
 0xf72   :  { %v557_v56 = vpop.permute.xlu2 %556 }
 0xf73   :  { %v559_v43 = vmul.f32 %v557_v56, %v535_v42 }
 0xf74   :  { %v834_v10 = vpop.permute.xlu0 %833 }
 0xf75   :  { %v836_v61 = vmul.f32 %v834_v10, %v814_v31  ;;  %561 = vrot.lane.b32.xlu1 %v559_v43, %s1639_s5 }
 0xf77   :  { %838 = vrot.lane.b32.xlu2 %v836_v61, %s1639_s5 }
 0xfd1   :  { %v839_v62 = vpop.permute.xlu2 %838 }
 0xfd2   :  { %v1882_v63 = vadd.f32 %v1523_v48, %v839_v62 }
 0xfd4   :  { %843 = vrot.lane.b32.xlu1 %v1882_v63, %s1636_s27 }
 0xfe7   :  { %v562_v0 = vpop.permute.xlu1 %561 }
 0xfe8   :  { %v1886_v1 = vadd.f32 %v1525_v52, %v562_v0 }
 0xfea   :  { %v566_v3 = vrot.slane %v1886_v1, 2 }
 0xfec   :  { %567 = vrot.lane.b32.xlu0 %v566_v3, %s1636_s27 }
0x1046   :  { %v844_v5 = vpop.permute.xlu1 %843 }
0x105e   :  { %v568_v4 = vpop.permute.xlu0 %567 }
0x105f   :  { %1444 = vmatmul.msk.f32.vlgmr.msrb.gmra.mxu0 %vm80_vm0, %v568_v4 }
0x1060   :  { %1090 = vmatpush.msrb.mxu0 %v1819_v57 }
0x1062   :  { %1091 = vmatpush.msrb.mxu0 %v1821_v58 }
0x1064   :  { %1092 = vmatpush.msrb.mxu0 %v1825_v59 }
0x1066   :  { %1093 = vmatpush.msrb.mxu0 %v1831_v60 }
0x1067   :  { %1451 = vmatmul.msk.f32.vlgmr.msra.gmra.mxu0 %vm80_vm0, %v844_v5 }
0x10dc   :  { %v588_v7 = vpop.f32.mrf.mxu0 }
0x10dd   :  { %v614_v8 = vadd.f32 %v588_v7, %v1748_v15  ;;  %v592_v17 = vrot.slane %v588_v7, 4 }
0x10df   :  { %v616_v9 = vrot.slane %v614_v8, 4  ;;  %v594_v18 = vadd.f32 %v592_v17, %v1746_v14 }
0x10e1   :  { %617 = vrot.lane.b32.xlu2 %v616_v9, %s1636_s27  ;;  %v1445_v20 = vmul.f32 -1.442695, %v594_v18 }
0x10e3   :  { %1526 = vpow2.f32 %v1445_v20 }
0x10e4   :  { %v864_v12 = vpop.f32.mrf.mxu0 }
0x10e5   :  { %v890_v13 = vadd.f32 %v864_v12, %v1859_v2  ;;  %v868_v23 = vrot.slane %v864_v12, 6 }
0x10e7   :  { %v892_v16 = vrot.slane %v890_v13, 6  ;;  %v870_v25 = vadd.f32 %v868_v23, %v1869_v6 }
0x10e9   :  { %893 = vrot.lane.b32.xlu0 %v892_v16, %s1636_s27  ;;  %v1527_v21 = vpop.eup %1526  ;;  %v1452_v27 = vmul.f32 -1.442695, %v870_v25 }
0x10ea   :  { %v598_v22 = vadd.f32 1.0, %v1527_v21 }
0x10ec   :  { %1528 = vrcp.f32 %v598_v22  ;;  %v610_v30 = vand.u32 2147483648, %v598_v22  ;;  %vm604_vm3 = vweird.f32 %v598_v22  ;;  %v608_v31 = vand.u32 2147483647, %v598_v22 }
0x10ed   :  { %1530 = vpow2.f32 %v1452_v27 }
0x10ee   :  { %v611_v34 = vor.u32 1.1754944e-38, %v610_v30  ;;  %vm609_vm5 = vcmp.eq.f32.partialorder %v608_v31, 8.507059e+37 }
0x10f2   :  { %v1529_v19 = vpop.eup %1528 }
0x10f3   :  { %v600_v24 = vmul.f32 %v1529_v19, %v598_v22  ;;  %vm605_vm2 = vweird.f32 %v1529_v19  ;;  %v1531_v32 = vpop.eup %1530 }
0x10f4   :  { %vm606_vm4 = vmor %vm604_vm3, %vm605_vm2  ;;  %v874_v35 = vadd.f32 1.0, %v1531_v32 }
0x10f5   :  { %v601_v26 = vsub.f32 1.0, %v600_v24 }
0x10f6   :  { %1532 = vrcp.f32 %v874_v35  ;;  %v886_v45 = vand.u32 2147483648, %v874_v35  ;;  %vm880_vm10 = vweird.f32 %v874_v35  ;;  %v884_v46 = vand.u32 2147483647, %v874_v35 }
0x10f7   :  { %v602_v28 = vmul.f32 %v1529_v19, %v601_v26 }
0x10f8   :  { %v887_v49 = vor.u32 1.1754944e-38, %v886_v45  ;;  %vm885_vm12 = vcmp.eq.f32.partialorder %v884_v46, 8.507059e+37 }
0x10f9   :  { %v603_v29 = vadd.f32 %v1529_v19, %v602_v28 }
0x10fb   :  { %v607_v33 = vsel %vm606_vm4, %v1529_v19, %v603_v29 }
0x10fc   :  { %v612_v36 = vsel %vm609_vm5, %v611_v34, %v607_v33  ;;  %v1533_v39 = vpop.eup %1532 }
0x10fd   :  { %v876_v40 = vmul.f32 %v1533_v39, %v874_v35  ;;  %vm881_vm9 = vweird.f32 %v1533_v39 }
0x10fe   :  { %vm882_vm11 = vmor %vm880_vm10, %vm881_vm9 }
0x10ff   :  { %v877_v41 = vsub.f32 1.0, %v876_v40 }
0x1101   :  { %v878_v42 = vmul.f32 %v1533_v39, %v877_v41 }
0x1103   :  { %v879_v44 = vadd.f32 %v1533_v39, %v878_v42 }
0x1105   :  { %v883_v48 = vsel %vm882_vm11, %v1533_v39, %v879_v44 }
0x1106   :  { %v888_v51 = vsel %vm885_vm12, %v887_v49, %v883_v48 }
0x113b   :  { %v618_v37 = vpop.permute.xlu2 %617 }
0x113c   :  { %v620_v38 = vmul.f32 %v618_v37, %v612_v36 }
0x113e   :  { %622 = vrot.lane.b32.xlu1 %v620_v38, %s1636_s27 }
0x115b   :  { %v894_v50 = vpop.permute.xlu0 %893 }
0x115c   :  { %v896_v52 = vmul.f32 %v894_v50, %v888_v51 }
0x115e   :  { %898 = vrot.lane.b32.xlu2 %v896_v52, %s1636_s27 }
0x11b0   :  { %v623_v53 = vpop.permute.xlu1 %622 }
0x11b1   :  { %v625_v54 = vadd.f32 %v623_v53, %v1746_v14 }
0x11b3   :  { %1534 = vtanh.f32 %v625_v54 }
0x11b8   :  { %v899_v55 = vpop.permute.xlu2 %898 }
0x11b9   :  { %v1535_v56 = vpop.eup %1534  ;;  %v901_v43 = vadd.f32 %v899_v55, %v1869_v6 }
0x11ba   :  { %v628_v10 = vrot.slane %v1535_v56, 2 }
0x11bb   :  { %1536 = vtanh.f32 %v901_v43 }
0x11bc   :  { %v630_v61 = vsub.f32 %v1886_v1, %v628_v10 }
0x11be   :  { %v632_v62 = vrot.slane %v630_v61, 6 }
0x11c0   :  { %633 = vrot.lane.b32.xlu0 %v632_v62, %s1638_s3 }
0x11c1   :  { %v1537_v0 = vpop.eup %1536 }
0x11c2   :  { %v904_v3 = vrot.slane %v1537_v0, 2 }
0x11c4   :  { %v906_v4 = vsub.f32 %v1882_v63, %v904_v3 }
0x11c6   :  { %v908_v5 = vrot.slane %v906_v4, 6 }
0x11c8   :  { %909 = vrot.lane.b32.xlu1 %v908_v5, %s1638_s3 }
0x1232   :  { %v634_v7 = vpop.permute.xlu0 %633 }
0x1233   :  { %v636_v8 = vmul.f32 %v634_v7, %v612_v36 }
0x1235   :  { %638 = vrot.lane.b32.xlu2 %v636_v8, %s1639_s5 }
0x123a   :  { %v910_v9 = vpop.permute.xlu1 %909 }
0x123b   :  { %v912_v12 = vmul.f32 %v910_v9, %v888_v51 }
0x123d   :  { %914 = vrot.lane.b32.xlu0 %v912_v12, %s1639_s5 }
0x128f   :  { %v639_v13 = vpop.permute.xlu2 %638 }
0x1290   :  { %v1912_v16 = vadd.f32 %v1535_v56, %v639_v13 }
0x1292   :  { %v643_v17 = vrot.slane %v1912_v16, 4 }
0x1294   :  { %644 = vrot.lane.b32.xlu1 %v643_v17, %s1636_s27 }
0x12af   :  { %v915_v18 = vpop.permute.xlu0 %914 }
0x12b0   :  { %v1916_v20 = vadd.f32 %v1537_v0, %v915_v18 }
0x12b2   :  { %v919_v21 = vrot.slane %v1916_v20, 2 }
0x12b4   :  { %920 = vrot.lane.b32.xlu2 %v919_v21, %s1636_s27 }
0x1306   :  { %v645_v22 = vpop.permute.xlu1 %644 }
0x1307   :  { %1446 = vmatmul.msk.f32.vlgmr.msrb.gmra.mxu1 %vm80_vm0, %v645_v22 }
0x1308   :  { %1162 = vmatpush.msrb.mxu1 %v1819_v57 }
0x130a   :  { %1163 = vmatpush.msrb.mxu1 %v1821_v58 }
0x130c   :  { %1164 = vmatpush.msrb.mxu1 %v1825_v59 }
0x130e   :  { %v921_v19 = vpop.permute.xlu2 %920  ;;  %1165 = vmatpush.msrb.mxu1 %v1831_v60 }
0x130f   :  { %1453 = vmatmul.msk.f32.vlgmr.msra.gmra.mxu1 %vm80_vm0, %v921_v19 }
0x1384   :  { %v665_v23 = vpop.f32.mrf.mxu1 }
0x1385   :  { %v691_v50 = vadd.f32 %v665_v23, %v1748_v15  ;;  %v669_v56 = vrot.slane %v665_v23, 2 }
0x1387   :  { %v693_v51 = vrot.slane %v691_v50, 2  ;;  %v671_v43 = vadd.f32 %v669_v56, %v1746_v14 }
0x1389   :  { %v1447_v10 = vmul.f32 -1.442695, %v671_v43 }
0x138c   :  { %v941_v24 = vpop.f32.mrf.mxu1 }
0x138d   :  { %v967_v25 = vadd.f32 %v941_v24, %v1859_v2  ;;  %v945_v27 = vrot.slane %v941_v24, 4 }
0x138f   :  { %v969_v26 = vrot.slane %v967_v25, 4  ;;  %v947_v28 = vadd.f32 %v945_v27, %v1869_v6 }
0x1391   :  { %970 = vrot.lane.b32.xlu0 %v969_v26, %s1636_s27  ;;  %v1454_v57 = vmul.f32 -1.442695, %v947_v28 }
0x1393   :  { %1538 = vpow2.f32 %v1454_v57 }
0x1399   :  { %v1539_v58 = vpop.eup %1538 }
0x139a   :  { %v951_v29 = vadd.f32 1.0, %v1539_v58 }
0x139c   :  { %1540 = vrcp.f32 %v951_v29  ;;  %v963_v33 = vand.u32 2147483648, %v951_v29  ;;  %vm957_vm14 = vweird.f32 %v951_v29  ;;  %v961_v34 = vand.u32 2147483647, %v951_v29 }
0x139e   :  { %v964_v36 = vor.u32 1.1754944e-38, %v963_v33  ;;  %vm962_vm1 = vcmp.eq.f32.partialorder %v961_v34, 8.507059e+37 }
0x13a2   :  { %v1541_v59 = vpop.eup %1540 }
0x13a3   :  { %v953_v30 = vmul.f32 %v1541_v59, %v951_v29  ;;  %vm958_vm13 = vweird.f32 %v1541_v59 }
0x13a4   :  { %vm959_vm15 = vmor %vm957_vm14, %vm958_vm13 }
0x13a5   :  { %v954_v60 = vsub.f32 1.0, %v953_v30 }
0x13a7   :  { %v955_v31 = vmul.f32 %v1541_v59, %v954_v60 }
0x13a9   :  { %v956_v32 = vadd.f32 %v1541_v59, %v955_v31 }
0x13ab   :  { %v960_v35 = vsel %vm959_vm15, %v1541_v59, %v956_v32 }
0x13ac   :  { %v965_v38 = vsel %vm962_vm1, %v964_v36, %v960_v35 }
0x1403   :  { %v971_v37 = vpop.permute.xlu0 %970 }
0x1404   :  { %v973_v39 = vmul.f32 %v971_v37, %v965_v38 }
0x1406   :  { %975 = vrot.lane.b32.xlu1 %v973_v39, %s1636_s27 }
0x1478   :  { %v976_v40 = vpop.permute.xlu1 %975 }
0x1479   :  { %v978_v41 = vadd.f32 %v976_v40, %v1869_v6 }
0x147b   :  { %1542 = vtanh.f32 %v978_v41 }
0x147c   :  { %1544 = vpow2.f32 %v1447_v10 }
0x1481   :  { %v1543_v42 = vpop.eup %1542 }
0x1482   :  { %v981_v44 = vrot.slane %v1543_v42, 2  ;;  %v1545_v61 = vpop.eup %1544 }
0x1483   :  { %v675_v15 = vadd.f32 1.0, %v1545_v61 }
0x1484   :  { %v983_v45 = vsub.f32 %v1916_v20, %v981_v44 }
0x1485   :  { %1546 = vrcp.f32 %v675_v15  ;;  %v687_v12 = vand.u32 2147483648, %v675_v15  ;;  %vm681_vm3 = vweird.f32 %v675_v15  ;;  %v685_v13 = vand.u32 2147483647, %v675_v15 }
0x1486   :  { %v985_v46 = vrot.slane %v983_v45, 6 }
0x1487   :  { %v688_v18 = vor.u32 1.1754944e-38, %v687_v12  ;;  %vm686_vm5 = vcmp.eq.f32.partialorder %v685_v13, 8.507059e+37 }
0x1488   :  { %986 = vrot.lane.b32.xlu2 %v985_v46, %s1638_s3 }
0x148b   :  { %v1547_v62 = vpop.eup %1546 }
0x148c   :  { %v677_v0 = vmul.f32 %v1547_v62, %v675_v15  ;;  %vm682_vm2 = vweird.f32 %v1547_v62 }
0x148d   :  { %vm683_vm4 = vmor %vm681_vm3, %vm682_vm2 }
0x148e   :  { %v678_v3 = vsub.f32 1.0, %v677_v0 }
0x1490   :  { %v679_v4 = vmul.f32 %v1547_v62, %v678_v3 }
0x1492   :  { %v680_v8 = vadd.f32 %v1547_v62, %v679_v4 }
0x1494   :  { %v684_v17 = vsel %vm683_vm4, %v1547_v62, %v680_v8 }
0x1495   :  { %v689_v22 = vsel %vm686_vm5, %v688_v18, %v684_v17 }
0x14e2   :  { %v987_v48 = vpop.permute.xlu2 %986 }
0x14e3   :  { %v989_v49 = vmul.f32 %v987_v48, %v965_v38 }
0x14e5   :  { %991 = vrot.lane.b32.xlu0 %v989_v49, %s1639_s5 }
0x14ed   :  { %694 = vrot.lane.b32.xlu0 %v693_v51, %s1636_s27 }
0x1557   :  { %v992_v52 = vpop.permute.xlu0 %991 }
0x1558   :  { %v1936_v53 = vadd.f32 %v1543_v42, %v992_v52 }
0x155a   :  { %v996_v54 = vrot.slane %v1936_v53, 4 }
0x155c   :  { %997 = vrot.lane.b32.xlu1 %v996_v54, %s1636_s27 }
0x155f   :  { %v695_v21 = vpop.permute.xlu0 %694 }
0x1560   :  { %v697_v19 = vmul.f32 %v695_v21, %v689_v22 }
0x15ce   :  { %v998_v55 = vpop.permute.xlu1 %997 }
0x15cf   :  { %1455 = vmatmul.msk.f32.vlgmr.msrb.gmra.mxu3 %vm80_vm0, %v998_v55 }
0x1652   :  { %v1018_v5 = vpop.f32.mrf.mxu3 }
0x1653   :  { %v1044_v7 = vadd.f32 %v1018_v5, %v1859_v2  ;;  %v1022_v23 = vrot.slane %v1018_v5, 2 }
0x1655   :  { %v1046_v9 = vrot.slane %v1044_v7, 2  ;;  %v1024_v24 = vadd.f32 %v1022_v23, %v1869_v6 }
0x1657   :  { %1047 = vrot.lane.b32.xlu2 %v1046_v9, %s1636_s27  ;;  %v1456_v25 = vmul.f32 -1.442695, %v1024_v24 }
0x1659   :  { %1548 = vpow2.f32 %v1456_v25 }
0x165f   :  { %699 = vrot.lane.b32.xlu2 %v697_v19, %s1636_s27  ;;  %v1549_v26 = vpop.eup %1548 }
0x1660   :  { %v1028_v27 = vadd.f32 1.0, %v1549_v26 }
0x1662   :  { %1550 = vrcp.f32 %v1028_v27  ;;  %v1040_v30 = vand.u32 2147483648, %v1028_v27  ;;  %vm1034_vm10 = vweird.f32 %v1028_v27  ;;  %v1038_v60 = vand.u32 2147483647, %v1028_v27 }
0x1664   :  { %v1041_v32 = vor.u32 1.1754944e-38, %v1040_v30  ;;  %vm1039_vm12 = vcmp.eq.f32.partialorder %v1038_v60, 8.507059e+37 }
0x1668   :  { %v1551_v28 = vpop.eup %1550 }
0x1669   :  { %v1030_v57 = vmul.f32 %v1551_v28, %v1028_v27  ;;  %vm1035_vm9 = vweird.f32 %v1551_v28 }
0x166a   :  { %vm1036_vm11 = vmor %vm1034_vm10, %vm1035_vm9 }
0x166b   :  { %v1031_v58 = vsub.f32 1.0, %v1030_v57 }
0x166d   :  { %v1032_v29 = vmul.f32 %v1551_v28, %v1031_v58 }
0x166f   :  { %v1033_v59 = vadd.f32 %v1551_v28, %v1032_v29 }
0x1671   :  { %v1037_v31 = vsel %vm1036_vm11, %v1551_v28, %v1033_v59 }
0x1672   :  { %v1042_v34 = vsel %vm1039_vm12, %v1041_v32, %v1037_v31 }
0x16b1   :  { %v1048_v33 = vpop.permute.xlu2 %1047 }
0x16b2   :  { %v1050_v35 = vmul.f32 %v1048_v33, %v1042_v34 }
0x16b4   :  { %1052 = vrot.lane.b32.xlu1 %v1050_v35, %s1636_s27 }
0x16b9   :  { %v700_v36 = vpop.permute.xlu2 %699 }
0x16ba   :  { %v702_v37 = vadd.f32 %v700_v36, %v1746_v14 }
0x16bc   :  { %1552 = vtanh.f32 %v702_v37 }
0x16c2   :  { %v1553_v38 = vpop.eup %1552 }
0x16c3   :  { %v705_v39 = vrot.slane %v1553_v38, 2 }
0x16c5   :  { %v707_v40 = vsub.f32 %v1912_v16, %v705_v39 }
0x16c7   :  { %v709_v41 = vrot.slane %v707_v40, 6 }
0x16c9   :  { %710 = vrot.lane.b32.xlu1 %v709_v41, %s1638_s3 }
0x1726   :  { %v1053_v42 = vpop.permute.xlu1 %1052 }
0x1727   :  { %v1055_v44 = vadd.f32 %v1053_v42, %v1869_v6  ;;  %v725_v6 = vsel %vm719_vm6, %v1815_v47, %v1886_v1 }
0x1728   :  { %v726_v56 = vsel %vm721_vm7, %v725_v6, %v1912_v16 }
0x1729   :  { %1554 = vtanh.f32 %v1055_v44 }
0x172f   :  { %v1555_v45 = vpop.eup %1554 }
0x1730   :  { %v1058_v46 = vrot.slane %v1555_v45, 2 }
0x1732   :  { %v1060_v48 = vsub.f32 %v1936_v53, %v1058_v46 }
0x1734   :  { %v1062_v49 = vrot.slane %v1060_v48, 6 }
0x1736   :  { %1063 = vrot.lane.b32.xlu0 %v1062_v49, %s1638_s3 }
0x173b   :  { %v711_v14 = vpop.permute.xlu1 %710 }
0x173c   :  { %v713_v50 = vmul.f32 %v711_v14, %v689_v22 }
0x173e   :  { %715 = vrot.lane.b32.xlu0 %v713_v50, %s1639_s5 }
0x17a8   :  { %v1064_v51 = vpop.permute.xlu0 %1063 }
0x17a9   :  { %v1066_v52 = vmul.f32 %v1064_v51, %v1042_v34 }
0x17ab   :  { %1068 = vrot.lane.b32.xlu2 %v1066_v52, %s1639_s5 }
0x17b0   :  { %v716_v54 = vpop.permute.xlu0 %715 }
0x17b1   :  { %v718_v55 = vadd.f32 %v1553_v38, %v716_v54 }
0x17b3   :  { %v727_v43 = vsel %vm723_vm8, %v726_v56, %v718_v55 }
0x17b4   :  { %740 = vrot.lane.b32.xlu2 %v727_v43, %s1636_s27 }
0x1805   :  { %v1069_v10 = vpop.permute.xlu2 %1068 }
0x1806   :  { %v1962_v61 = vadd.f32 %v1555_v45, %v1069_v10 }
0x1808   :  { %v1073_v15 = vrot.slane %v1962_v61, 6 }
0x180a   :  { %1074 = vrot.lane.b32.xlu1 %v1073_v15, %s1636_s27 }
0x180e   :  { %v741_v62 = vpop.permute.xlu2 %740 }
0x180f   :  { %1449 = vmatmul.msk.f32.gmra.mxu2 %vm80_vm0, %v741_v62 }
0x187c   :  { %v1075_v0 = vpop.permute.xlu1 %1074 }
0x187d   :  { %1457 = vmatmul.msk.f32.vlgmr.msrb.gmra.mxu0 %vm80_vm0, %v1075_v0 }
0x1892   :  { %v766_v16 = vpop.f32.mrf.mxu2 }
0x1893   :  { %v1971_v3 = vadd.f32 %v1866_v11, %v766_v16 }
0x18fa   :  { %v1095_v47 = vpop.f32.mrf.mxu0 }
0x18fb   :  { %v1118_v1 = vadd.f32 %v1095_v47, %v1859_v2  ;;  %v1098_v4 = vadd.f32 %v1095_v47, %v1971_v3 }
0x18fd   :  { %1120 = vrot.lane.b32.xlu0 %v1118_v1, %s1636_s27  ;;  %v1458_v5 = vmul.f32 -1.442695, %v1098_v4 }
0x18ff   :  { %1556 = vpow2.f32 %v1458_v5 }
0x1905   :  { %v1557_v7 = vpop.eup %1556 }
0x1906   :  { %v1102_v8 = vadd.f32 1.0, %v1557_v7 }
0x1908   :  { %1558 = vrcp.f32 %v1102_v8  ;;  %v1114_v21 = vand.u32 2147483648, %v1102_v8  ;;  %vm1108_vm14 = vweird.f32 %v1102_v8  ;;  %v1112_v22 = vand.u32 2147483647, %v1102_v8 }
0x190a   :  { %v1115_v11 = vor.u32 1.1754944e-38, %v1114_v21  ;;  %vm1113_vm1 = vcmp.eq.f32.partialorder %v1112_v22, 8.507059e+37 }
0x190e   :  { %v1559_v9 = vpop.eup %1558 }
0x190f   :  { %v1104_v12 = vmul.f32 %v1559_v9, %v1102_v8  ;;  %vm1109_vm13 = vweird.f32 %v1559_v9 }
0x1910   :  { %vm1110_vm15 = vmor %vm1108_vm14, %vm1109_vm13 }
0x1911   :  { %v1105_v13 = vsub.f32 1.0, %v1104_v12 }
0x1913   :  { %v1106_v17 = vmul.f32 %v1559_v9, %v1105_v13 }
0x1915   :  { %v1107_v18 = vadd.f32 %v1559_v9, %v1106_v17 }
0x1917   :  { %v1111_v19 = vsel %vm1110_vm15, %v1559_v9, %v1107_v18 }
0x1918   :  { %v1116_v23 = vsel %vm1113_vm1, %v1115_v11, %v1111_v19 }
0x196f   :  { %v1121_v24 = vpop.permute.xlu0 %1120 }
0x1970   :  { %v1123_v25 = vmul.f32 %v1121_v24, %v1116_v23 }
0x1972   :  { %1125 = vrot.lane.b32.xlu1 %v1123_v25, %s1636_s27 }
0x19e4   :  { %v1126_v26 = vpop.permute.xlu1 %1125 }
0x19e5   :  { %v1128_v27 = vadd.f32 %v1126_v26, %v1971_v3 }
0x19e7   :  { %1560 = vtanh.f32 %v1128_v27 }
0x19ed   :  { %v1561_v28 = vpop.eup %1560 }
0x19ee   :  { %v1131_v57 = vrot.slane %v1561_v28, 2 }
0x19f0   :  { %v1133_v58 = vsub.f32 %v1962_v61, %v1131_v57 }
0x19f2   :  { %v1135_v29 = vrot.slane %v1133_v58, 6 }
0x19f4   :  { %1136 = vrot.lane.b32.xlu2 %v1135_v29, %s1638_s3 }
0x1a4e   :  { %v1137_v59 = vpop.permute.xlu2 %1136 }
0x1a4f   :  { %v1139_v30 = vmul.f32 %v1137_v59, %v1116_v23 }
0x1a51   :  { %1141 = vrot.lane.b32.xlu0 %v1139_v30, %s1639_s5 }
0x1ac3   :  { %v1142_v60 = vpop.permute.xlu0 %1141 }
0x1ac4   :  { %v1979_v31 = vadd.f32 %v1561_v28, %v1142_v60 }
0x1ac6   :  { %1146 = vrot.lane.b32.xlu1 %v1979_v31, %s1636_s27 }
0x1b38   :  { %v1147_v32 = vpop.permute.xlu1 %1146 }
0x1b39   :  { %1459 = vmatmul.msk.f32.vlgmr.msrb.gmra.mxu1 %vm80_vm0, %v1147_v32 }
0x1bb6   :  { %v1167_v33 = vpop.f32.mrf.mxu1 }
0x1bb7   :  { %v1193_v34 = vadd.f32 %v1167_v33, %v1859_v2  ;;  %v1171_v36 = vrot.slane %v1167_v33, 6 }
0x1bb9   :  { %v1195_v35 = vrot.slane %v1193_v34, 6  ;;  %v1173_v37 = vadd.f32 %v1171_v36, %v1971_v3 }
0x1bbb   :  { %1196 = vrot.lane.b32.xlu2 %v1195_v35, %s1636_s27  ;;  %v1460_v38 = vmul.f32 -1.442695, %v1173_v37 }
0x1bbd   :  { %1562 = vpow2.f32 %v1460_v38 }
0x1bc3   :  { %v1563_v39 = vpop.eup %1562 }
0x1bc4   :  { %v1177_v40 = vadd.f32 1.0, %v1563_v39 }
0x1bc6   :  { %1564 = vrcp.f32 %v1177_v40  ;;  %v1189_v48 = vand.u32 2147483648, %v1177_v40  ;;  %vm1183_vm3 = vweird.f32 %v1177_v40  ;;  %v1187_v49 = vand.u32 2147483647, %v1177_v40 }
0x1bc8   :  { %v1190_v50 = vor.u32 1.1754944e-38, %v1189_v48  ;;  %vm1188_vm5 = vcmp.eq.f32.partialorder %v1187_v49, 8.507059e+37 }
0x1bcc   :  { %v1565_v41 = vpop.eup %1564 }
0x1bcd   :  { %v1179_v42 = vmul.f32 %v1565_v41, %v1177_v40  ;;  %vm1184_vm2 = vweird.f32 %v1565_v41 }
0x1bce   :  { %vm1185_vm4 = vmor %vm1183_vm3, %vm1184_vm2  ;;  %vm1422_vm2 = vcmask 15360  }
0x1bcf   :  { %v1180_v44 = vsub.f32 1.0, %v1179_v42 }
0x1bd1   :  { %v1181_v45 = vmul.f32 %v1565_v41, %v1180_v44 }
0x1bd3   :  { %v1182_v46 = vadd.f32 %v1565_v41, %v1181_v45 }
0x1bd5   :  { %v1186_v14 = vsel %vm1185_vm4, %v1565_v41, %v1182_v46 }
0x1bd6   :  { %v1191_v52 = vsel %vm1188_vm5, %v1190_v50, %v1186_v14 }
0x1c15   :  { %v1197_v51 = vpop.permute.xlu2 %1196 }
0x1c16   :  { %v1199_v54 = vmul.f32 %v1197_v51, %v1191_v52 }
0x1c18   :  { %1201 = vrot.lane.b32.xlu0 %v1199_v54, %s1636_s27 }
0x1c8a   :  { %v1202_v6 = vpop.permute.xlu0 %1201 }
0x1c8b   :  { %v1204_v55 = vadd.f32 %v1202_v6, %v1971_v3 }
0x1c8d   :  { %1566 = vtanh.f32 %v1204_v55 }
0x1c93   :  { %v1567_v56 = vpop.eup %1566 }
0x1c94   :  { %v1207_v43 = vrot.slane %v1567_v56, 2 }
0x1c96   :  { %v1209_v10 = vsub.f32 %v1979_v31, %v1207_v43 }
0x1c98   :  { %v1211_v15 = vrot.slane %v1209_v10, 6 }
0x1c9a   :  { %1212 = vrot.lane.b32.xlu1 %v1211_v15, %s1638_s3 }
0x1d0c   :  { %v1213_v62 = vpop.permute.xlu1 %1212 }
0x1d0d   :  { %v1215_v0 = vmul.f32 %v1213_v62, %v1191_v52  ;;  %v1375_v62 = vsel %vm719_vm6, %v1882_v63, %v1916_v20  ;;  %v1382_v63 = vld [vmem:[%s2065_s9 + $0x8] sm:$0xff]  ;;  %v1381_v20 = vld [vmem:[%s2065_s9] sm:$0xff] }
0x1d0f   :  { %1217 = vrot.lane.b32.xlu2 %v1215_v0, %s1639_s5  ;;  %v1376_v0 = vsel %vm721_vm7, %v1375_v62, %v1936_v53 }
0x1d69   :  { %v1218_v47 = vpop.permute.xlu2 %1217 }
0x1d6a   :  { %v1992_v1 = vadd.f32 %v1567_v56, %v1218_v47  ;;  %v1377_v47 = vsel %vm723_vm8, %v1376_v0, %v1962_v61 }
0x1d6c   :  { %v1222_v16 = vrot.slane %v1992_v1, 2 }
0x1d6e   :  { %1223 = vrot.lane.b32.xlu0 %v1222_v16, %s1636_s27  ;;  %v1384_v16 = vld [vmem:[%s2065_s9 + $0x18] sm:$0xff] }
0x1d6f   :  { %1411 = vmatpush.msra.mxu0 %v1384_v16 }
0x1de0   :  { %v1224_v4 = vpop.permute.xlu0 %1223 }
0x1de1   :  { %1461 = vmatmul.msk.f32.vlgmr.msrb.gmra.mxu2 %vm80_vm0, %v1224_v4  ;;  %v1383_v4 = vld [vmem:[%s2065_s9 + $0x10] sm:$0xff] }
0x1de2   :  { %1412 = vmatpush.msra.mxu0 %v1383_v4 }
0x1de4   :  { %1413 = vmatpush.msra.mxu0 %v1382_v63 }
0x1de6   :  { %1414 = vmatpush.msra.mxu0 %v1381_v20 }
0x1e64   :  { %v1244_v5 = vpop.f32.mrf.mxu2 }
0x1e65   :  { %v1270_v7 = vadd.f32 %v1244_v5, %v1859_v2  ;;  %v1248_v9 = vrot.slane %v1244_v5, 4 }
0x1e67   :  { %v1272_v8 = vrot.slane %v1270_v7, 4  ;;  %v1250_v12 = vadd.f32 %v1248_v9, %v1971_v3 }
0x1e69   :  { %1273 = vrot.lane.b32.xlu1 %v1272_v8, %s1636_s27  ;;  %v1462_v13 = vmul.f32 -1.442695, %v1250_v12 }
0x1e6b   :  { %1568 = vpow2.f32 %v1462_v13 }
0x1e71   :  { %v1569_v17 = vpop.eup %1568 }
0x1e72   :  { %v1254_v18 = vadd.f32 1.0, %v1569_v17 }
0x1e74   :  { %1570 = vrcp.f32 %v1254_v18  ;;  %v1266_v24 = vand.u32 2147483648, %v1254_v18  ;;  %vm1260_vm10 = vweird.f32 %v1254_v18  ;;  %v1264_v25 = vand.u32 2147483647, %v1254_v18 }
0x1e76   :  { %v1267_v27 = vor.u32 1.1754944e-38, %v1266_v24  ;;  %vm1265_vm12 = vcmp.eq.f32.partialorder %v1264_v25, 8.507059e+37 }
0x1e7a   :  { %v1571_v21 = vpop.eup %1570 }
0x1e7b   :  { %v1256_v22 = vmul.f32 %v1571_v21, %v1254_v18  ;;  %vm1261_vm9 = vweird.f32 %v1571_v21  ;;  %v1483_v18 = vld [vmem:[%s2066_s10] ss:$0 sm:$0xff] }
0x1e7c   :  { %vm1262_vm11 = vmor %vm1260_vm10, %vm1261_vm9 }
0x1e7d   :  { %v1257_v19 = vsub.f32 1.0, %v1256_v22 }
0x1e7f   :  { %v1258_v11 = vmul.f32 %v1571_v21, %v1257_v19  ;;  %v1378_v19 = vsel %vm719_vm6, %v1979_v31, %v1992_v1 }
0x1e81   :  { %v1259_v23 = vadd.f32 %v1571_v21, %v1258_v11 }
0x1e83   :  { %v1263_v26 = vsel %vm1262_vm11, %v1571_v21, %v1259_v23 }
0x1e84   :  { %v1268_v57 = vsel %vm1265_vm12, %v1267_v27, %v1263_v26 }
0x1edb   :  { %v1274_v28 = vpop.permute.xlu1 %1273 }
0x1edc   :  { %v1276_v58 = vmul.f32 %v1274_v28, %v1268_v57 }
0x1ede   :  { %1278 = vrot.lane.b32.xlu2 %v1276_v58, %s1636_s27 }
0x1f38   :  { %v1279_v29 = vpop.permute.xlu2 %1278 }
0x1f39   :  { %v1281_v59 = vadd.f32 %v1279_v29, %v1971_v3 }
0x1f3b   :  { %1572 = vtanh.f32 %v1281_v59 }
0x1f41   :  { %v1573_v30 = vpop.eup %1572 }
0x1f42   :  { %v1284_v60 = vrot.slane %v1573_v30, 2 }
0x1f44   :  { %v1286_v32 = vsub.f32 %v1992_v1, %v1284_v60 }
0x1f46   :  { %v1288_v33 = vrot.slane %v1286_v32, 6 }
0x1f48   :  { %1289 = vrot.lane.b32.xlu0 %v1288_v33, %s1638_s3 }
0x1fba   :  { %v1290_v34 = vpop.permute.xlu0 %1289 }
0x1fbb   :  { %v1292_v35 = vmul.f32 %v1290_v34, %v1268_v57 }
0x1fbd   :  { %1294 = vrot.lane.b32.xlu1 %v1292_v35, %s1639_s5 }
0x202f   :  { %v1295_v36 = vpop.permute.xlu1 %1294 }
0x2030   :  { %v2005_v37 = vadd.f32 %v1573_v30, %v1295_v36 }
0x2032   :  { %v1299_v38 = vrot.slane %v2005_v37, 4  ;;  %v1379_v23 = vsel %vm721_vm7, %v1378_v19, %v2005_v37 }
0x2034   :  { %1300 = vrot.lane.b32.xlu2 %v1299_v38, %s1636_s27 }
0x208e   :  { %v1301_v39 = vpop.permute.xlu2 %1300 }
0x208f   :  { %1463 = vmatmul.msk.f32.vlgmr.msra.gmra.mxu3 %vm80_vm0, %v1301_v39 }
0x2112   :  { %v1321_v40 = vpop.f32.mrf.mxu3 }
0x2113   :  { %v1347_v41 = vadd.f32 %v1321_v40, %v1859_v2  ;;  %v1325_v44 = vrot.slane %v1321_v40, 2 }
0x2115   :  { %v1349_v42 = vrot.slane %v1347_v41, 2  ;;  %v1327_v45 = vadd.f32 %v1325_v44, %v1971_v3 }
0x2117   :  { %1350 = vrot.lane.b32.xlu0 %v1349_v42, %s1636_s27  ;;  %v1464_v46 = vmul.f32 -1.442695, %v1327_v45 }
0x2119   :  { %1574 = vpow2.f32 %v1464_v46 }
0x211f   :  { %v1575_v48 = vpop.eup %1574 }
0x2120   :  { %v1331_v49 = vadd.f32 1.0, %v1575_v48 }
0x2122   :  { %1576 = vrcp.f32 %v1331_v49  ;;  %v1343_v6 = vand.u32 2147483648, %v1331_v49  ;;  %vm1337_vm14 = vweird.f32 %v1331_v49  ;;  %v1341_v2 = vand.u32 2147483647, %v1331_v49 }
0x2124   :  { %v1344_v56 = vor.u32 1.1754944e-38, %v1343_v6  ;;  %vm1342_vm1 = vcmp.eq.f32.partialorder %v1341_v2, 8.507059e+37 }
0x2128   :  { %v1577_v14 = vpop.eup %1576 }
0x2129   :  { %v1333_v50 = vmul.f32 %v1577_v14, %v1331_v49  ;;  %vm1338_vm13 = vweird.f32 %v1577_v14 }
0x212a   :  { %vm1339_vm15 = vmor %vm1337_vm14, %vm1338_vm13 }
0x212b   :  { %v1334_v51 = vsub.f32 1.0, %v1333_v50 }
0x212d   :  { %v1335_v52 = vmul.f32 %v1577_v14, %v1334_v51 }
0x212f   :  { %v1336_v54 = vadd.f32 %v1577_v14, %v1335_v52 }
0x2131   :  { %v1340_v55 = vsel %vm1339_vm15, %v1577_v14, %v1336_v54 }
0x2132   :  { %v1345_v10 = vsel %vm1342_vm1, %v1344_v56, %v1340_v55 }
0x2189   :  { %v1351_v43 = vpop.permute.xlu0 %1350 }
0x218a   :  { %v1353_v15 = vmul.f32 %v1351_v43, %v1345_v10 }
0x218c   :  { %1355 = vrot.lane.b32.xlu1 %v1353_v15, %s1636_s27 }
0x2194   :  { %1391 = vrot.lane.b32.xlu1 %v1377_v47, %s1636_s27 }
0x21fe   :  { %v1356_v53 = vpop.permute.xlu1 %1355 }
0x21ff   :  { %v1358_v61 = vadd.f32 %v1356_v53, %v1971_v3 }
0x2201   :  { %1578 = vtanh.f32 %v1358_v61 }
0x2206   :  { %v1392_v5 = vpop.permute.xlu1 %1391 }
0x2207   :  { %v1579_v7 = vpop.eup %1578  ;;  %1465 = vmatmul.msk.f32.vlgmr.msra.gmra.mxu0 %vm80_vm0, %v1392_v5 }
0x2208   :  { %v1361_v8 = vrot.slane %v1579_v7, 2 }
0x220a   :  { %v1363_v9 = vsub.f32 %v2005_v37, %v1361_v8 }
0x220c   :  { %v1365_v12 = vrot.slane %v1363_v9, 6 }
0x220e   :  { %1366 = vrot.lane.b32.xlu2 %v1365_v12, %s1638_s3 }
0x2268   :  { %v1367_v13 = vpop.permute.xlu2 %1366 }
0x2269   :  { %v1369_v17 = vmul.f32 %v1367_v13, %v1345_v10 }
0x226b   :  { %1371 = vrot.lane.b32.xlu0 %v1369_v17, %s1639_s5 }
0x2284   :  { %v1416_v3 = vpop.f32.mrf.mxu0 }
0x2285   :  { %v1417_v21 = vadd.f32 %v1483_v18, %v1416_v3 }
0x2287   :  { %1423 = vst.msk [vmem:[%s2067_s11] sm:$0xff] %vm1422_vm2, %v1417_v21 }
0x22dd   :  { %v1372_v22 = vpop.permute.xlu0 %1371 }
0x22de   :  { %v1374_v11 = vadd.f32 %v1579_v7, %v1372_v22 }
0x22e0   :  { %v1380_v24 = vsel %vm723_vm8, %v1379_v23, %v1374_v11 }
0x22e1   :  { %1393 = vrot.lane.b32.xlu2 %v1380_v24, %s1636_s27 }
0x233b   :  { %v1394_v25 = vpop.permute.xlu2 %1393 }
0x233c   :  { %1466 = vmatmul.msk.f32.gmra.mxu0 %vm80_vm0, %v1394_v25 }
0x23b9   :  { %v1419_v26 = vpop.f32.mrf.mxu0 }
0x23ba   :  { %v1420_v27 = vadd.f32 %v1483_v18, %v1419_v26 }
0x23bc   :  { %1424 = vst.msk [vmem:[%s2067_s11 + $0x8] sm:$0xff] %vm1422_vm2, %v1420_v27 }
0x23bd   :  { %1429 = vsyncpa [#allocation3], 1 }
0x23be   :  { %1430 = vsyncpa [#allocation5], 1 }

</bundles_post_ra>
